<compile_context>
chip_gen: v7x
topology: tpu7x:2x2x1
jax: 0.10.0
libtpu: 0.0.40
codegen_flags: <defaults>
</compile_context>

<pallas_src>
import math
import numpy as np
import jax
import jax.numpy as jnp
from jax import lax
from jax.experimental import pallas as pl
from jax.experimental.pallas import tpu as pltpu  # noqa: F401  (TPU backend import)

# ---------------- config ----------------
VOCAB = 32
N_EMBED = 32
N_HEAD = 4
HEAD_DIM = N_EMBED // N_HEAD          # 8
FFN_DIM = 64
N_LAYER = 2
PAD_ID = 0
MAX_POS = 64
B = 2
S = 8
BS = B * S                            # 16 flattened tokens
HBS = N_HEAD * BS                     # 64: flattened (head, key) axis
SCALING = HEAD_DIM ** (-0.5)
EMBED_SCALE = math.sqrt(N_EMBED)      # scale_embedding=True
EPS = 1e-5
W3 = 3 * N_EMBED                      # 96: fused qkv width == weight-slab lane width

# weight-slab per-layer row offsets (lane width W3 = 96)
_R_QKV = 0           # rows [0,32)   : [wq*scaling | wk | wv]      (32, 96)
_R_WO = 32           # rows [32,64)  : wo in lanes [0,32)          (32, 96)
_R_FC1 = 64          # rows [64,96)  : fc1 in lanes [0,64)         (32, 96)
_R_FC2 = 96          # rows [96,160) : fc2 in lanes [0,32)         (64, 96)
_R_BIAS = 160        # rows [160,168): biases + LN params          (8, 96)
_W_ROWS = 168        # per-layer rows; slab is (N_LAYER*_W_ROWS, 96)

# constant-slab row offsets (lane width N_EMBED = 32)
_C_EMB = 0           # rows [0,32)  : embedding table * EMBED_SCALE (pad row zero)
_C_POS = 32          # rows [32,40) : sinusoidal pos emb for positions [0,S)
_C_LN = 40           # rows [40,44) : emb-LN gamma/beta, final-LN gamma/beta
_C_ROWS = 48

_NT = (((1,), (1,)), ((), ()))        # dot_general dims: contract lane dims (A @ B^T)


# ---------------- fused Pallas kernel ----------------
def _fused_forward_kernel(ids_ref, c_ref, w_ref, o_ref):
    f32 = jnp.float32

    ids_col = ids_ref[:, 0:1]                       # (BS, 1) int32  (tokens along sublanes)
    ids_row = ids_ref[0:1, :]                       # (1, BS) int32  (tokens along lanes)

    # --- token embedding via one-hot matmul (exact: pad row of the scaled table is zero) ---
    vocab_iota = lax.broadcasted_iota(jnp.int32, (BS, VOCAB), 1)
    onehot = (ids_col == vocab_iota).astype(f32)                                  # (BS, V)
    x = jnp.dot(onehot, c_ref[_C_EMB:_C_EMB + VOCAB, :],
                preferred_element_type=f32)                                       # (BS, D)

    # --- sinusoidal positional embeddings for positions [0,S), tiled over the batch ---
    pos = c_ref[_C_POS:_C_POS + S, :]                                             # (S, D)
    x = x + jnp.concatenate([pos] * B, axis=0)                                    # (BS, D)

    def layer_norm(v, g, b):
        mu = jnp.mean(v, axis=-1, keepdims=True)
        vc = v - mu
        var = jnp.mean(vc * vc, axis=-1, keepdims=True)
        return vc * lax.rsqrt(var + EPS) * g + b

    x = layer_norm(x, c_ref[_C_LN + 0:_C_LN + 1, :], c_ref[_C_LN + 1:_C_LN + 2, :])

    # --- hoisted constants (shared by all layers / heads) ---
    # additive attention bias over (query, head*key): mask pad keys + cross-batch pairs.
    iq = lax.broadcasted_iota(jnp.int32, (BS, BS), 0)
    ik = lax.broadcasted_iota(jnp.int32, (BS, BS), 1)
    cross_batch = jnp.right_shift(iq, 3) != jnp.right_shift(ik, 3)                # // S, S=8
    masked16 = jnp.logical_or(cross_batch, ids_row == PAD_ID)                     # (BS, BS)
    bias16 = jnp.where(masked16, -1e9, 0.0)
    bias = jnp.concatenate([bias16] * N_HEAD, axis=1)                             # (BS, HBS)

    # block-diagonal head selector: 1 where head(row of tiled K/V) == head(feature lane)
    r64 = lax.broadcasted_iota(jnp.int32, (HBS, N_EMBED), 0)
    c32 = lax.broadcasted_iota(jnp.int32, (HBS, N_EMBED), 1)
    head_sel = (jnp.right_shift(r64, 4) == jnp.right_shift(c32, 3)).astype(f32)   # (HBS, D)

    # per-head segment-sum matrix: broadcasts each head's softmax denominator over its keys
    ra = lax.broadcasted_iota(jnp.int32, (HBS, HBS), 0)
    ca = lax.broadcasted_iota(jnp.int32, (HBS, HBS), 1)
    seg_sum = (jnp.right_shift(ra, 4) == jnp.right_shift(ca, 4)).astype(f32)      # (HBS, HBS)

    for l in range(N_LAYER):            # static unroll; weights stay resident in VMEM
        base = l * _W_ROWS
        b_qkv = w_ref[base + _R_BIAS + 0:base + _R_BIAS + 1, :]                   # (1, 96)
        b_o = w_ref[base + _R_BIAS + 1:base + _R_BIAS + 2, 0:N_EMBED]
        b_1 = w_ref[base + _R_BIAS + 2:base + _R_BIAS + 3, 0:FFN_DIM]
        b_2 = w_ref[base + _R_BIAS + 3:base + _R_BIAS + 4, 0:N_EMBED]
        ln1_g = w_ref[base + _R_BIAS + 4:base + _R_BIAS + 5, 0:N_EMBED]
        ln1_b = w_ref[base + _R_BIAS + 5:base + _R_BIAS + 6, 0:N_EMBED]
        ln2_g = w_ref[base + _R_BIAS + 6:base + _R_BIAS + 7, 0:N_EMBED]
        ln2_b = w_ref[base + _R_BIAS + 7:base + _R_BIAS + 8, 0:N_EMBED]

        # ---- self-attention (post-LN) ----
        residual = x
        qkv = jnp.dot(x, w_ref[base + _R_QKV:base + _R_QKV + N_EMBED, :],
                      preferred_element_type=f32) + b_qkv                         # (BS, 3D)
        q = qkv[:, 0:N_EMBED]                 # q-scaling folded into wq/bq at pack time
        k = qkv[:, N_EMBED:2 * N_EMBED]
        v = qkv[:, 2 * N_EMBED:3 * N_EMBED]

        # all-head scores with a single NT matmul: rows of kx enumerate (head, key) and
        # head_sel zeroes lanes belonging to other heads -> no per-head slicing/stacking.
        kx = jnp.concatenate([k] * N_HEAD, axis=0) * head_sel                     # (HBS, D)
        s = lax.dot_general(q, kx, _NT, preferred_element_type=f32)               # (BS, HBS)
        s = s + bias                            # masked entries underflow to 0 after exp
        s = s - jnp.max(s, axis=-1, keepdims=True)
        p = jnp.exp(s)
        denom = jnp.dot(p, seg_sum, preferred_element_type=f32)                   # per-head sums
        p = p * pl.reciprocal(denom, approx=True)

        vx = jnp.concatenate([v] * N_HEAD, axis=0) * head_sel                     # (HBS, D)
        ctx = jnp.dot(p, vx, preferred_element_type=f32)                          # (BS, D), heads concat'd
        attn = jnp.dot(ctx, w_ref[base + _R_WO:base + _R_WO + N_EMBED, 0:N_EMBED],
                       preferred_element_type=f32) + b_o
        x = layer_norm(residual + attn, ln1_g, ln1_b)

        # ---- feed-forward (relu) ----
        residual = x
        h1 = jnp.maximum(
            jnp.dot(x, w_ref[base + _R_FC1:base + _R_FC1 + N_EMBED, 0:FFN_DIM],
                    preferred_element_type=f32) + b_1, 0.0)
        h2 = jnp.dot(h1, w_ref[base + _R_FC2:base + _R_FC2 + FFN_DIM, 0:N_EMBED],
                     preferred_element_type=f32) + b_2
        x = layer_norm(residual + h2, ln2_g, ln2_b)
        # TODO(synk): PyTorch clamps only when isinf/isnan appears; no-op for finite eval inputs.

    # ---- final layer norm (add_final_layer_norm=True) ----
    x = layer_norm(x, c_ref[_C_LN + 2:_C_LN + 3, :], c_ref[_C_LN + 3:_C_LN + 4, :])
    o_ref[...] = x


def hidden_transformer_forward(input_ids, packed):
    Bn, Sn = input_ids.shape
    assert (Bn, Sn) == (B, S)
    ids = input_ids.reshape(BS).astype(jnp.int32)
    # single tiny int32 operand carrying both orientations of the token ids
    ids_slab = jnp.zeros((BS, BS), jnp.int32).at[0, :].set(ids).at[:, 0].set(ids)
    out_flat = pl.pallas_call(
        _fused_forward_kernel,
        out_shape=jax.ShapeDtypeStruct((BS, N_EMBED), jnp.float32),
        cost_estimate=pl.CostEstimate(flops=1_100_000, transcendentals=4_200,
                                      bytes_accessed=140_000),
        # no grid / BlockSpecs: single invocation, all operands resident in VMEM
    )(ids_slab, packed["const"], packed["w"])
    return out_flat.reshape(B, S, N_EMBED)


# ---------------- parameters (natural form, matching the PyTorch module) ----------------
def sinusoidal_table(n_pos, dim):
    pe = np.array([[pos / np.power(10000, 2 * (j // 2) / dim) for j in range(dim)]
                   for pos in range(n_pos)])
    out = np.zeros((n_pos, dim), dtype=np.float32)
    out[:, : dim // 2] = np.sin(pe[:, 0::2])
    out[:, dim // 2:] = np.cos(pe[:, 1::2])
    return jnp.asarray(out)


def init_params(key):
    keys = list(jax.random.split(key, 1 + N_LAYER * 12))
    ki = iter(keys)

    def lin(din, dout):
        w = jax.random.normal(next(ki), (din, dout), jnp.float32) * 0.05
        b = jax.random.normal(next(ki), (dout,), jnp.float32) * 0.05
        return w, b

    emb = jax.random.normal(next(ki), (VOCAB, N_EMBED), jnp.float32) * 0.1
    emb = emb.at[PAD_ID].set(0.0)          # nn.Embedding padding_idx row is zero

    ones_d = jnp.ones((N_EMBED,), jnp.float32)
    zeros_d = jnp.zeros((N_EMBED,), jnp.float32)

    layers = []
    for _ in range(N_LAYER):
        wq, bq = lin(N_EMBED, N_EMBED)
        wk, bk = lin(N_EMBED, N_EMBED)
        wv, bv = lin(N_EMBED, N_EMBED)
        wo, bo = lin(N_EMBED, N_EMBED)
        w1, b1 = lin(N_EMBED, FFN_DIM)
        w2, b2 = lin(FFN_DIM, N_EMBED)
        layers.append(dict(wq=wq, bq=bq, wk=wk, bk=bk, wv=wv, bv=bv, wo=wo, bo=bo,
                           w1=w1, b1=b1, w2=w2, b2=b2,
                           ln1_g=ones_d, ln1_b=zeros_d, ln2_g=ones_d, ln2_b=zeros_d))
    return dict(emb=emb, pos=sinusoidal_table(MAX_POS, N_EMBED),
                ln_emb_g=ones_d, ln_emb_b=zeros_d,
                ln_final_g=ones_d, ln_final_b=zeros_d,
                layers=layers)


# ---------------- packing: natural params -> the two kernel slabs ----------------
def _pad_vec(v):
    return jnp.pad(v, (0, W3 - v.shape[0]))


def _pad_lanes(a):
    return jnp.pad(a, ((0, 0), (0, W3 - a.shape[1])))


def pack_params(P):
    const = jnp.zeros((_C_ROWS, N_EMBED), jnp.float32)
    const = const.at[_C_EMB:_C_EMB + VOCAB, :].set(P["emb"] * EMBED_SCALE)  # embed scale folded
    const = const.at[_C_POS:_C_POS + S, :].set(P["pos"][:S])                # only pos[:S] shipped
    const = const.at[_C_LN + 0, :].set(P["ln_emb_g"])
    const = const.at[_C_LN + 1, :].set(P["ln_emb_b"])
    const = const.at[_C_LN + 2, :].set(P["ln_final_g"])
    const = const.at[_C_LN + 3, :].set(P["ln_final_b"])

    w_rows = []
    for lp in P["layers"]:
        slab = jnp.zeros((_W_ROWS, W3), jnp.float32)
        wqkv = jnp.concatenate([lp["wq"] * SCALING, lp["wk"], lp["wv"]], axis=1)  # q scale folded
        slab = slab.at[_R_QKV:_R_QKV + N_EMBED, :].set(wqkv)
        slab = slab.at[_R_WO:_R_WO + N_EMBED, :].set(_pad_lanes(lp["wo"]))
        slab = slab.at[_R_FC1:_R_FC1 + N_EMBED, :].set(_pad_lanes(lp["w1"]))
        slab = slab.at[_R_FC2:_R_FC2 + FFN_DIM, :].set(_pad_lanes(lp["w2"]))
        bias_rows = jnp.stack([
            jnp.concatenate([lp["bq"] * SCALING, lp["bk"], lp["bv"]]),
            _pad_vec(lp["bo"]), _pad_vec(lp["b1"]), _pad_vec(lp["b2"]),
            _pad_vec(lp["ln1_g"]), _pad_vec(lp["ln1_b"]),
            _pad_vec(lp["ln2_g"]), _pad_vec(lp["ln2_b"]),
        ])
        slab = slab.at[_R_BIAS:_R_BIAS + 8, :].set(bias_rows)
        w_rows.append(slab)
    return {"const": const, "w": jnp.concatenate(w_rows, axis=0)}   # (N_LAYER*168, 96)


# ---------------- pure-JAX reference (for verification) ----------------
def ref_forward(input_ids, P):
    Bn, Sn = input_ids.shape
    mask = input_ids == PAD_ID
    x = P["emb"][input_ids] * EMBED_SCALE
    x = x + P["pos"][:Sn][None]

    def ln(v, g, b):
        mu = v.mean(-1, keepdims=True)
        vc = v - mu
        var = (vc * vc).mean(-1, keepdims=True)
        return vc / jnp.sqrt(var + EPS) * g + b

    x = ln(x, P["ln_emb_g"], P["ln_emb_b"])
    D = N_EMBED
    for lp in P["layers"]:
        res = x
        q = (x @ lp["wq"] + lp["bq"]) * SCALING
        k = x @ lp["wk"] + lp["bk"]
        v = x @ lp["wv"] + lp["bv"]
        q = q.reshape(Bn, Sn, N_HEAD, HEAD_DIM).transpose(0, 2, 1, 3)
        k = k.reshape(Bn, Sn, N_HEAD, HEAD_DIM).transpose(0, 2, 1, 3)
        v = v.reshape(Bn, Sn, N_HEAD, HEAD_DIM).transpose(0, 2, 1, 3)
        s = jnp.einsum("bhqd,bhkd->bhqk", q, k)
        s = jnp.where(mask[:, None, None, :], -1e9, s)
        pr = jax.nn.softmax(s, axis=-1)
        a = jnp.einsum("bhqk,bhkd->bhqd", pr, v).transpose(0, 2, 1, 3).reshape(Bn, Sn, D)
        a = a @ lp["wo"] + lp["bo"]
        x = ln(res + a, lp["ln1_g"], lp["ln1_b"])
        res = x
        h = jnp.maximum(x @ lp["w1"] + lp["b1"], 0.0)
        x = ln(res + h @ lp["w2"] + lp["b2"], lp["ln2_g"], lp["ln2_b"])
    return ln(x, P["ln_final_g"], P["ln_final_b"])


if __name__ == "__main__":
    key = jax.random.PRNGKey(0)
    pkey, ikey = jax.random.split(key)
    params = init_params(pkey)
    packed = pack_params(params)

    input_ids = jax.random.randint(ikey, (B, S), 1, VOCAB, dtype=jnp.int32)
    input_ids = input_ids.at[1, -2:].set(PAD_ID)   # some padding tokens in batch 1

    out = jax.block_until_ready(hidden_transformer_forward(input_ids, packed))
    ref = jax.block_until_ready(ref_forward(input_ids, params))

    assert out.shape == (B, S, N_EMBED)
    if not jnp.allclose(out, ref, rtol=2e-3, atol=2e-3):
        raise AssertionError("Pallas output mismatch vs reference: max abs diff = %s"
                             % float(jnp.max(jnp.abs(out - ref))))
    print("KERNEL_OK")
</pallas_src>

<mosaic_0001>
module attributes {stable_mosaic.version = 11 : i64} {
  func.func @_fused_forward_kernel(%arg0: memref<16x16xi32, #tpu.memory_space<vmem>>, %arg1: memref<48x32xf32, #tpu.memory_space<vmem>>, %arg2: memref<336x96xf32, #tpu.memory_space<vmem>>, %arg3: memref<16x32xf32, #tpu.memory_space<vmem>>) attributes {dimension_semantics = [], scalar_prefetch = 0 : i64, scratch_operands = 0 : i64, tpu.core_type = #tpu.core_type<tc>} {
    %c0 = arith.constant 0 : index
    %c0_0 = arith.constant 0 : index
    %0 = vector.load %arg0[%c0, %c0_0] : memref<16x16xi32, #tpu.memory_space<vmem>>, vector<16x1xi32>
    %c0_1 = arith.constant 0 : index
    %c0_2 = arith.constant 0 : index
    %1 = vector.load %arg0[%c0_1, %c0_2] : memref<16x16xi32, #tpu.memory_space<vmem>>, vector<1x16xi32>
    %2 = tpu.iota {dimensions = array<i32: 1>} : vector<16x32xi32>
    %3 = vector.broadcast %0 : vector<16x1xi32> to vector<16x32xi32>
    %4 = arith.cmpi eq, %3, %2 : vector<16x32xi32>
    %5 = arith.extui %4 : vector<16x32xi1> to vector<16x32xi32>
    %6 = arith.sitofp %5 : vector<16x32xi32> to vector<16x32xf32>
    %c0_3 = arith.constant 0 : index
    %c0_4 = arith.constant 0 : index
    %7 = vector.load %arg1[%c0_3, %c0_4] : memref<48x32xf32, #tpu.memory_space<vmem>>, vector<32x32xf32>
    %cst = arith.constant dense<0.000000e+00> : vector<16x32xf32>
    %8 = tpu.matmul %6, %7, %cst {dimension_numbers = #tpu.dot_dimension_numbers<[1], [0], [0], [1], [0, 0, 1, 1], [], []>} : vector<16x32xf32>, vector<32x32xf32>, vector<16x32xf32> -> vector<16x32xf32>
    %c32 = arith.constant 32 : index
    %c0_5 = arith.constant 0 : index
    %9 = vector.load %arg1[%c32, %c0_5] : memref<48x32xf32, #tpu.memory_space<vmem>>, vector<8x32xf32>
    %10 = tpu.concatenate %9, %9 in 0 : vector<8x32xf32>, vector<8x32xf32> -> vector<16x32xf32>
    %11 = arith.addf %8, %10 : vector<16x32xf32>
    %c40 = arith.constant 40 : index
    %c0_6 = arith.constant 0 : index
    %12 = vector.load %arg1[%c40, %c0_6] : memref<48x32xf32, #tpu.memory_space<vmem>>, vector<1x32xf32>
    %c41 = arith.constant 41 : index
    %c0_7 = arith.constant 0 : index
    %13 = vector.load %arg1[%c41, %c0_7] : memref<48x32xf32, #tpu.memory_space<vmem>>, vector<1x32xf32>
    %cst_8 = arith.constant dense<0.000000e+00> : vector<16xf32>
    %14 = vector.multi_reduction <add>, %11, %cst_8 [1] : vector<16x32xf32> to vector<16xf32>
    %15 = vector.shape_cast %14 : vector<16xf32> to vector<16x1xf32>
    %cst_9 = arith.constant 3.200000e+01 : f32
    %16 = vector.broadcast %cst_9 : f32 to vector<16x1xf32>
    %17 = arith.divf %15, %16 : vector<16x1xf32>
    %18 = vector.broadcast %17 : vector<16x1xf32> to vector<16x32xf32>
    %19 = arith.subf %11, %18 : vector<16x32xf32>
    %20 = arith.mulf %19, %19 : vector<16x32xf32>
    %cst_10 = arith.constant dense<0.000000e+00> : vector<16xf32>
    %21 = vector.multi_reduction <add>, %20, %cst_10 [1] : vector<16x32xf32> to vector<16xf32>
    %22 = vector.shape_cast %21 : vector<16xf32> to vector<16x1xf32>
    %cst_11 = arith.constant 3.200000e+01 : f32
    %23 = vector.broadcast %cst_11 : f32 to vector<16x1xf32>
    %24 = arith.divf %22, %23 : vector<16x1xf32>
    %cst_12 = arith.constant 9.99999974E-6 : f32
    %25 = vector.broadcast %cst_12 : f32 to vector<16x1xf32>
    %26 = arith.addf %24, %25 : vector<16x1xf32>
    %27 = math.rsqrt %26 : vector<16x1xf32>
    %28 = vector.broadcast %27 : vector<16x1xf32> to vector<16x32xf32>
    %29 = arith.mulf %19, %28 : vector<16x32xf32>
    %30 = vector.broadcast %12 : vector<1x32xf32> to vector<16x32xf32>
    %31 = arith.mulf %29, %30 : vector<16x32xf32>
    %32 = vector.broadcast %13 : vector<1x32xf32> to vector<16x32xf32>
    %33 = arith.addf %31, %32 : vector<16x32xf32>
    %34 = tpu.iota {dimensions = array<i32: 0>} : vector<16x16xi32>
    %35 = tpu.iota {dimensions = array<i32: 1>} : vector<16x16xi32>
    %c3_i32 = arith.constant 3 : i32
    %36 = vector.broadcast %c3_i32 : i32 to vector<16x16xi32>
    %37 = arith.shrsi %34, %36 : vector<16x16xi32>
    %c3_i32_13 = arith.constant 3 : i32
    %38 = vector.broadcast %c3_i32_13 : i32 to vector<16x16xi32>
    %39 = arith.shrsi %35, %38 : vector<16x16xi32>
    %40 = arith.cmpi ne, %37, %39 : vector<16x16xi32>
    %c0_i32 = arith.constant 0 : i32
    %41 = vector.broadcast %c0_i32 : i32 to vector<1x16xi32>
    %42 = arith.cmpi eq, %1, %41 : vector<1x16xi32>
    %43 = vector.broadcast %42 : vector<1x16xi1> to vector<16x16xi1>
    %44 = arith.ori %40, %43 : vector<16x16xi1>
    %cst_14 = arith.constant -1.000000e+09 : f32
    %cst_15 = arith.constant 0.000000e+00 : f32
    %45 = vector.broadcast %cst_14 : f32 to vector<16x16xf32>
    %46 = vector.broadcast %cst_15 : f32 to vector<16x16xf32>
    %47 = arith.select %44, %45, %46 : vector<16x16xi1>, vector<16x16xf32>
    %48 = tpu.concatenate %47, %47, %47, %47 in 1 : vector<16x16xf32>, vector<16x16xf32>, vector<16x16xf32>, vector<16x16xf32> -> vector<16x64xf32>
    %49 = tpu.iota {dimensions = array<i32: 0>} : vector<64x32xi32>
    %50 = tpu.iota {dimensions = array<i32: 1>} : vector<64x32xi32>
    %c4_i32 = arith.constant 4 : i32
    %51 = vector.broadcast %c4_i32 : i32 to vector<64x32xi32>
    %52 = arith.shrsi %49, %51 : vector<64x32xi32>
    %c3_i32_16 = arith.constant 3 : i32
    %53 = vector.broadcast %c3_i32_16 : i32 to vector<64x32xi32>
    %54 = arith.shrsi %50, %53 : vector<64x32xi32>
    %55 = arith.cmpi eq, %52, %54 : vector<64x32xi32>
    %56 = arith.extui %55 : vector<64x32xi1> to vector<64x32xi32>
    %57 = arith.sitofp %56 : vector<64x32xi32> to vector<64x32xf32>
    %58 = tpu.iota {dimensions = array<i32: 0>} : vector<64x64xi32>
    %59 = tpu.iota {dimensions = array<i32: 1>} : vector<64x64xi32>
    %c4_i32_17 = arith.constant 4 : i32
    %60 = vector.broadcast %c4_i32_17 : i32 to vector<64x64xi32>
    %61 = arith.shrsi %58, %60 : vector<64x64xi32>
    %c4_i32_18 = arith.constant 4 : i32
    %62 = vector.broadcast %c4_i32_18 : i32 to vector<64x64xi32>
    %63 = arith.shrsi %59, %62 : vector<64x64xi32>
    %64 = arith.cmpi eq, %61, %63 : vector<64x64xi32>
    %65 = arith.extui %64 : vector<64x64xi1> to vector<64x64xi32>
    %66 = arith.sitofp %65 : vector<64x64xi32> to vector<64x64xf32>
    %c160 = arith.constant 160 : index
    %c0_19 = arith.constant 0 : index
    %67 = vector.load %arg2[%c160, %c0_19] : memref<336x96xf32, #tpu.memory_space<vmem>>, vector<1x96xf32>
    %c161 = arith.constant 161 : index
    %c0_20 = arith.constant 0 : index
    %68 = vector.load %arg2[%c161, %c0_20] : memref<336x96xf32, #tpu.memory_space<vmem>>, vector<1x32xf32>
    %c162 = arith.constant 162 : index
    %c0_21 = arith.constant 0 : index
    %69 = vector.load %arg2[%c162, %c0_21] : memref<336x96xf32, #tpu.memory_space<vmem>>, vector<1x64xf32>
    %c163 = arith.constant 163 : index
    %c0_22 = arith.constant 0 : index
    %70 = vector.load %arg2[%c163, %c0_22] : memref<336x96xf32, #tpu.memory_space<vmem>>, vector<1x32xf32>
    %c164 = arith.constant 164 : index
    %c0_23 = arith.constant 0 : index
    %71 = vector.load %arg2[%c164, %c0_23] : memref<336x96xf32, #tpu.memory_space<vmem>>, vector<1x32xf32>
    %c165 = arith.constant 165 : index
    %c0_24 = arith.constant 0 : index
    %72 = vector.load %arg2[%c165, %c0_24] : memref<336x96xf32, #tpu.memory_space<vmem>>, vector<1x32xf32>
    %c166 = arith.constant 166 : index
    %c0_25 = arith.constant 0 : index
    %73 = vector.load %arg2[%c166, %c0_25] : memref<336x96xf32, #tpu.memory_space<vmem>>, vector<1x32xf32>
    %c167 = arith.constant 167 : index
    %c0_26 = arith.constant 0 : index
    %74 = vector.load %arg2[%c167, %c0_26] : memref<336x96xf32, #tpu.memory_space<vmem>>, vector<1x32xf32>
    %c0_27 = arith.constant 0 : index
    %c0_28 = arith.constant 0 : index
    %75 = vector.load %arg2[%c0_27, %c0_28] : memref<336x96xf32, #tpu.memory_space<vmem>>, vector<32x96xf32>
    %cst_29 = arith.constant dense<0.000000e+00> : vector<16x96xf32>
    %76 = tpu.matmul %33, %75, %cst_29 {dimension_numbers = #tpu.dot_dimension_numbers<[1], [0], [0], [1], [0, 0, 1, 1], [], []>} : vector<16x32xf32>, vector<32x96xf32>, vector<16x96xf32> -> vector<16x96xf32>
    %77 = vector.broadcast %67 : vector<1x96xf32> to vector<16x96xf32>
    %78 = arith.addf %76, %77 : vector<16x96xf32>
    %79 = vector.extract_strided_slice %78 {offsets = [0, 0], sizes = [16, 32], strides = [1, 1]} : vector<16x96xf32> to vector<16x32xf32>
    %80 = vector.extract_strided_slice %78 {offsets = [0, 32], sizes = [16, 32], strides = [1, 1]} : vector<16x96xf32> to vector<16x32xf32>
    %81 = vector.extract_strided_slice %78 {offsets = [0, 64], sizes = [16, 32], strides = [1, 1]} : vector<16x96xf32> to vector<16x32xf32>
    %82 = tpu.concatenate %80, %80, %80, %80 in 0 : vector<16x32xf32>, vector<16x32xf32>, vector<16x32xf32>, vector<16x32xf32> -> vector<64x32xf32>
    %83 = arith.mulf %82, %57 : vector<64x32xf32>
    %cst_30 = arith.constant dense<0.000000e+00> : vector<16x64xf32>
    %84 = tpu.matmul %79, %83, %cst_30 {dimension_numbers = #tpu.dot_dimension_numbers<[1], [1], [0], [0], [0, 0, 1, 0], [], []>} : vector<16x32xf32>, vector<64x32xf32>, vector<16x64xf32> -> vector<16x64xf32>
    %85 = arith.addf %84, %48 : vector<16x64xf32>
    %cst_31 = arith.constant dense<0xFF800000> : vector<16xf32>
    %86 = vector.multi_reduction <maximumf>, %85, %cst_31 [1] : vector<16x64xf32> to vector<16xf32>
    %87 = vector.shape_cast %86 : vector<16xf32> to vector<16x1xf32>
    %88 = vector.broadcast %87 : vector<16x1xf32> to vector<16x64xf32>
    %89 = arith.subf %85, %88 : vector<16x64xf32>
    %90 = math.exp %89 : vector<16x64xf32>
    %cst_32 = arith.constant dense<0.000000e+00> : vector<16x64xf32>
    %91 = tpu.matmul %90, %66, %cst_32 {dimension_numbers = #tpu.dot_dimension_numbers<[1], [0], [0], [1], [0, 0, 1, 1], [], []>} : vector<16x64xf32>, vector<64x64xf32>, vector<16x64xf32> -> vector<16x64xf32>
    %92 = tpu.reciprocal %91 {approx = true} : vector<16x64xf32> -> vector<16x64xf32>
    %93 = arith.mulf %90, %92 : vector<16x64xf32>
    %94 = tpu.concatenate %81, %81, %81, %81 in 0 : vector<16x32xf32>, vector<16x32xf32>, vector<16x32xf32>, vector<16x32xf32> -> vector<64x32xf32>
    %95 = arith.mulf %94, %57 : vector<64x32xf32>
    %cst_33 = arith.constant dense<0.000000e+00> : vector<16x32xf32>
    %96 = tpu.matmul %93, %95, %cst_33 {dimension_numbers = #tpu.dot_dimension_numbers<[1], [0], [0], [1], [0, 0, 1, 1], [], []>} : vector<16x64xf32>, vector<64x32xf32>, vector<16x32xf32> -> vector<16x32xf32>
    %c32_34 = arith.constant 32 : index
    %c0_35 = arith.constant 0 : index
    %97 = vector.load %arg2[%c32_34, %c0_35] : memref<336x96xf32, #tpu.memory_space<vmem>>, vector<32x32xf32>
    %cst_36 = arith.constant dense<0.000000e+00> : vector<16x32xf32>
    %98 = tpu.matmul %96, %97, %cst_36 {dimension_numbers = #tpu.dot_dimension_numbers<[1], [0], [0], [1], [0, 0, 1, 1], [], []>} : vector<16x32xf32>, vector<32x32xf32>, vector<16x32xf32> -> vector<16x32xf32>
    %99 = vector.broadcast %68 : vector<1x32xf32> to vector<16x32xf32>
    %100 = arith.addf %98, %99 : vector<16x32xf32>
    %101 = arith.addf %33, %100 : vector<16x32xf32>
    %cst_37 = arith.constant dense<0.000000e+00> : vector<16xf32>
    %102 = vector.multi_reduction <add>, %101, %cst_37 [1] : vector<16x32xf32> to vector<16xf32>
    %103 = vector.shape_cast %102 : vector<16xf32> to vector<16x1xf32>
    %cst_38 = arith.constant 3.200000e+01 : f32
    %104 = vector.broadcast %cst_38 : f32 to vector<16x1xf32>
    %105 = arith.divf %103, %104 : vector<16x1xf32>
    %106 = vector.broadcast %105 : vector<16x1xf32> to vector<16x32xf32>
    %107 = arith.subf %101, %106 : vector<16x32xf32>
    %108 = arith.mulf %107, %107 : vector<16x32xf32>
    %cst_39 = arith.constant dense<0.000000e+00> : vector<16xf32>
    %109 = vector.multi_reduction <add>, %108, %cst_39 [1] : vector<16x32xf32> to vector<16xf32>
    %110 = vector.shape_cast %109 : vector<16xf32> to vector<16x1xf32>
    %cst_40 = arith.constant 3.200000e+01 : f32
    %111 = vector.broadcast %cst_40 : f32 to vector<16x1xf32>
    %112 = arith.divf %110, %111 : vector<16x1xf32>
    %cst_41 = arith.constant 9.99999974E-6 : f32
    %113 = vector.broadcast %cst_41 : f32 to vector<16x1xf32>
    %114 = arith.addf %112, %113 : vector<16x1xf32>
    %115 = math.rsqrt %114 : vector<16x1xf32>
    %116 = vector.broadcast %115 : vector<16x1xf32> to vector<16x32xf32>
    %117 = arith.mulf %107, %116 : vector<16x32xf32>
    %118 = vector.broadcast %71 : vector<1x32xf32> to vector<16x32xf32>
    %119 = arith.mulf %117, %118 : vector<16x32xf32>
    %120 = vector.broadcast %72 : vector<1x32xf32> to vector<16x32xf32>
    %121 = arith.addf %119, %120 : vector<16x32xf32>
    %c64 = arith.constant 64 : index
    %c0_42 = arith.constant 0 : index
    %122 = vector.load %arg2[%c64, %c0_42] : memref<336x96xf32, #tpu.memory_space<vmem>>, vector<32x64xf32>
    %cst_43 = arith.constant dense<0.000000e+00> : vector<16x64xf32>
    %123 = tpu.matmul %121, %122, %cst_43 {dimension_numbers = #tpu.dot_dimension_numbers<[1], [0], [0], [1], [0, 0, 1, 1], [], []>} : vector<16x32xf32>, vector<32x64xf32>, vector<16x64xf32> -> vector<16x64xf32>
    %124 = vector.broadcast %69 : vector<1x64xf32> to vector<16x64xf32>
    %125 = arith.addf %123, %124 : vector<16x64xf32>
    %cst_44 = arith.constant 0.000000e+00 : f32
    %126 = vector.broadcast %cst_44 : f32 to vector<16x64xf32>
    %127 = arith.maximumf %125, %126 : vector<16x64xf32>
    %c96 = arith.constant 96 : index
    %c0_45 = arith.constant 0 : index
    %128 = vector.load %arg2[%c96, %c0_45] : memref<336x96xf32, #tpu.memory_space<vmem>>, vector<64x32xf32>
    %cst_46 = arith.constant dense<0.000000e+00> : vector<16x32xf32>
    %129 = tpu.matmul %127, %128, %cst_46 {dimension_numbers = #tpu.dot_dimension_numbers<[1], [0], [0], [1], [0, 0, 1, 1], [], []>} : vector<16x64xf32>, vector<64x32xf32>, vector<16x32xf32> -> vector<16x32xf32>
    %130 = vector.broadcast %70 : vector<1x32xf32> to vector<16x32xf32>
    %131 = arith.addf %129, %130 : vector<16x32xf32>
    %132 = arith.addf %121, %131 : vector<16x32xf32>
    %cst_47 = arith.constant dense<0.000000e+00> : vector<16xf32>
    %133 = vector.multi_reduction <add>, %132, %cst_47 [1] : vector<16x32xf32> to vector<16xf32>
    %134 = vector.shape_cast %133 : vector<16xf32> to vector<16x1xf32>
    %cst_48 = arith.constant 3.200000e+01 : f32
    %135 = vector.broadcast %cst_48 : f32 to vector<16x1xf32>
    %136 = arith.divf %134, %135 : vector<16x1xf32>
    %137 = vector.broadcast %136 : vector<16x1xf32> to vector<16x32xf32>
    %138 = arith.subf %132, %137 : vector<16x32xf32>
    %139 = arith.mulf %138, %138 : vector<16x32xf32>
    %cst_49 = arith.constant dense<0.000000e+00> : vector<16xf32>
    %140 = vector.multi_reduction <add>, %139, %cst_49 [1] : vector<16x32xf32> to vector<16xf32>
    %141 = vector.shape_cast %140 : vector<16xf32> to vector<16x1xf32>
    %cst_50 = arith.constant 3.200000e+01 : f32
    %142 = vector.broadcast %cst_50 : f32 to vector<16x1xf32>
    %143 = arith.divf %141, %142 : vector<16x1xf32>
    %cst_51 = arith.constant 9.99999974E-6 : f32
    %144 = vector.broadcast %cst_51 : f32 to vector<16x1xf32>
    %145 = arith.addf %143, %144 : vector<16x1xf32>
    %146 = math.rsqrt %145 : vector<16x1xf32>
    %147 = vector.broadcast %146 : vector<16x1xf32> to vector<16x32xf32>
    %148 = arith.mulf %138, %147 : vector<16x32xf32>
    %149 = vector.broadcast %73 : vector<1x32xf32> to vector<16x32xf32>
    %150 = arith.mulf %148, %149 : vector<16x32xf32>
    %151 = vector.broadcast %74 : vector<1x32xf32> to vector<16x32xf32>
    %152 = arith.addf %150, %151 : vector<16x32xf32>
    %c328 = arith.constant 328 : index
    %c0_52 = arith.constant 0 : index
    %153 = vector.load %arg2[%c328, %c0_52] : memref<336x96xf32, #tpu.memory_space<vmem>>, vector<1x96xf32>
    %c329 = arith.constant 329 : index
    %c0_53 = arith.constant 0 : index
    %154 = vector.load %arg2[%c329, %c0_53] : memref<336x96xf32, #tpu.memory_space<vmem>>, vector<1x32xf32>
    %c330 = arith.constant 330 : index
    %c0_54 = arith.constant 0 : index
    %155 = vector.load %arg2[%c330, %c0_54] : memref<336x96xf32, #tpu.memory_space<vmem>>, vector<1x64xf32>
    %c331 = arith.constant 331 : index
    %c0_55 = arith.constant 0 : index
    %156 = vector.load %arg2[%c331, %c0_55] : memref<336x96xf32, #tpu.memory_space<vmem>>, vector<1x32xf32>
    %c332 = arith.constant 332 : index
    %c0_56 = arith.constant 0 : index
    %157 = vector.load %arg2[%c332, %c0_56] : memref<336x96xf32, #tpu.memory_space<vmem>>, vector<1x32xf32>
    %c333 = arith.constant 333 : index
    %c0_57 = arith.constant 0 : index
    %158 = vector.load %arg2[%c333, %c0_57] : memref<336x96xf32, #tpu.memory_space<vmem>>, vector<1x32xf32>
    %c334 = arith.constant 334 : index
    %c0_58 = arith.constant 0 : index
    %159 = vector.load %arg2[%c334, %c0_58] : memref<336x96xf32, #tpu.memory_space<vmem>>, vector<1x32xf32>
    %c335 = arith.constant 335 : index
    %c0_59 = arith.constant 0 : index
    %160 = vector.load %arg2[%c335, %c0_59] : memref<336x96xf32, #tpu.memory_space<vmem>>, vector<1x32xf32>
    %c168 = arith.constant 168 : index
    %c0_60 = arith.constant 0 : index
    %161 = vector.load %arg2[%c168, %c0_60] : memref<336x96xf32, #tpu.memory_space<vmem>>, vector<32x96xf32>
    %cst_61 = arith.constant dense<0.000000e+00> : vector<16x96xf32>
    %162 = tpu.matmul %152, %161, %cst_61 {dimension_numbers = #tpu.dot_dimension_numbers<[1], [0], [0], [1], [0, 0, 1, 1], [], []>} : vector<16x32xf32>, vector<32x96xf32>, vector<16x96xf32> -> vector<16x96xf32>
    %163 = vector.broadcast %153 : vector<1x96xf32> to vector<16x96xf32>
    %164 = arith.addf %162, %163 : vector<16x96xf32>
    %165 = vector.extract_strided_slice %164 {offsets = [0, 0], sizes = [16, 32], strides = [1, 1]} : vector<16x96xf32> to vector<16x32xf32>
    %166 = vector.extract_strided_slice %164 {offsets = [0, 32], sizes = [16, 32], strides = [1, 1]} : vector<16x96xf32> to vector<16x32xf32>
    %167 = vector.extract_strided_slice %164 {offsets = [0, 64], sizes = [16, 32], strides = [1, 1]} : vector<16x96xf32> to vector<16x32xf32>
    %168 = tpu.concatenate %166, %166, %166, %166 in 0 : vector<16x32xf32>, vector<16x32xf32>, vector<16x32xf32>, vector<16x32xf32> -> vector<64x32xf32>
    %169 = arith.mulf %168, %57 : vector<64x32xf32>
    %cst_62 = arith.constant dense<0.000000e+00> : vector<16x64xf32>
    %170 = tpu.matmul %165, %169, %cst_62 {dimension_numbers = #tpu.dot_dimension_numbers<[1], [1], [0], [0], [0, 0, 1, 0], [], []>} : vector<16x32xf32>, vector<64x32xf32>, vector<16x64xf32> -> vector<16x64xf32>
    %171 = arith.addf %170, %48 : vector<16x64xf32>
    %cst_63 = arith.constant dense<0xFF800000> : vector<16xf32>
    %172 = vector.multi_reduction <maximumf>, %171, %cst_63 [1] : vector<16x64xf32> to vector<16xf32>
    %173 = vector.shape_cast %172 : vector<16xf32> to vector<16x1xf32>
    %174 = vector.broadcast %173 : vector<16x1xf32> to vector<16x64xf32>
    %175 = arith.subf %171, %174 : vector<16x64xf32>
    %176 = math.exp %175 : vector<16x64xf32>
    %cst_64 = arith.constant dense<0.000000e+00> : vector<16x64xf32>
    %177 = tpu.matmul %176, %66, %cst_64 {dimension_numbers = #tpu.dot_dimension_numbers<[1], [0], [0], [1], [0, 0, 1, 1], [], []>} : vector<16x64xf32>, vector<64x64xf32>, vector<16x64xf32> -> vector<16x64xf32>
    %178 = tpu.reciprocal %177 {approx = true} : vector<16x64xf32> -> vector<16x64xf32>
    %179 = arith.mulf %176, %178 : vector<16x64xf32>
    %180 = tpu.concatenate %167, %167, %167, %167 in 0 : vector<16x32xf32>, vector<16x32xf32>, vector<16x32xf32>, vector<16x32xf32> -> vector<64x32xf32>
    %181 = arith.mulf %180, %57 : vector<64x32xf32>
    %cst_65 = arith.constant dense<0.000000e+00> : vector<16x32xf32>
    %182 = tpu.matmul %179, %181, %cst_65 {dimension_numbers = #tpu.dot_dimension_numbers<[1], [0], [0], [1], [0, 0, 1, 1], [], []>} : vector<16x64xf32>, vector<64x32xf32>, vector<16x32xf32> -> vector<16x32xf32>
    %c200 = arith.constant 200 : index
    %c0_66 = arith.constant 0 : index
    %183 = vector.load %arg2[%c200, %c0_66] : memref<336x96xf32, #tpu.memory_space<vmem>>, vector<32x32xf32>
    %cst_67 = arith.constant dense<0.000000e+00> : vector<16x32xf32>
    %184 = tpu.matmul %182, %183, %cst_67 {dimension_numbers = #tpu.dot_dimension_numbers<[1], [0], [0], [1], [0, 0, 1, 1], [], []>} : vector<16x32xf32>, vector<32x32xf32>, vector<16x32xf32> -> vector<16x32xf32>
    %185 = vector.broadcast %154 : vector<1x32xf32> to vector<16x32xf32>
    %186 = arith.addf %184, %185 : vector<16x32xf32>
    %187 = arith.addf %152, %186 : vector<16x32xf32>
    %cst_68 = arith.constant dense<0.000000e+00> : vector<16xf32>
    %188 = vector.multi_reduction <add>, %187, %cst_68 [1] : vector<16x32xf32> to vector<16xf32>
    %189 = vector.shape_cast %188 : vector<16xf32> to vector<16x1xf32>
    %cst_69 = arith.constant 3.200000e+01 : f32
    %190 = vector.broadcast %cst_69 : f32 to vector<16x1xf32>
    %191 = arith.divf %189, %190 : vector<16x1xf32>
    %192 = vector.broadcast %191 : vector<16x1xf32> to vector<16x32xf32>
    %193 = arith.subf %187, %192 : vector<16x32xf32>
    %194 = arith.mulf %193, %193 : vector<16x32xf32>
    %cst_70 = arith.constant dense<0.000000e+00> : vector<16xf32>
    %195 = vector.multi_reduction <add>, %194, %cst_70 [1] : vector<16x32xf32> to vector<16xf32>
    %196 = vector.shape_cast %195 : vector<16xf32> to vector<16x1xf32>
    %cst_71 = arith.constant 3.200000e+01 : f32
    %197 = vector.broadcast %cst_71 : f32 to vector<16x1xf32>
    %198 = arith.divf %196, %197 : vector<16x1xf32>
    %cst_72 = arith.constant 9.99999974E-6 : f32
    %199 = vector.broadcast %cst_72 : f32 to vector<16x1xf32>
    %200 = arith.addf %198, %199 : vector<16x1xf32>
    %201 = math.rsqrt %200 : vector<16x1xf32>
    %202 = vector.broadcast %201 : vector<16x1xf32> to vector<16x32xf32>
    %203 = arith.mulf %193, %202 : vector<16x32xf32>
    %204 = vector.broadcast %157 : vector<1x32xf32> to vector<16x32xf32>
    %205 = arith.mulf %203, %204 : vector<16x32xf32>
    %206 = vector.broadcast %158 : vector<1x32xf32> to vector<16x32xf32>
    %207 = arith.addf %205, %206 : vector<16x32xf32>
    %c232 = arith.constant 232 : index
    %c0_73 = arith.constant 0 : index
    %208 = vector.load %arg2[%c232, %c0_73] : memref<336x96xf32, #tpu.memory_space<vmem>>, vector<32x64xf32>
    %cst_74 = arith.constant dense<0.000000e+00> : vector<16x64xf32>
    %209 = tpu.matmul %207, %208, %cst_74 {dimension_numbers = #tpu.dot_dimension_numbers<[1], [0], [0], [1], [0, 0, 1, 1], [], []>} : vector<16x32xf32>, vector<32x64xf32>, vector<16x64xf32> -> vector<16x64xf32>
    %210 = vector.broadcast %155 : vector<1x64xf32> to vector<16x64xf32>
    %211 = arith.addf %209, %210 : vector<16x64xf32>
    %cst_75 = arith.constant 0.000000e+00 : f32
    %212 = vector.broadcast %cst_75 : f32 to vector<16x64xf32>
    %213 = arith.maximumf %211, %212 : vector<16x64xf32>
    %c264 = arith.constant 264 : index
    %c0_76 = arith.constant 0 : index
    %214 = vector.load %arg2[%c264, %c0_76] : memref<336x96xf32, #tpu.memory_space<vmem>>, vector<64x32xf32>
    %cst_77 = arith.constant dense<0.000000e+00> : vector<16x32xf32>
    %215 = tpu.matmul %213, %214, %cst_77 {dimension_numbers = #tpu.dot_dimension_numbers<[1], [0], [0], [1], [0, 0, 1, 1], [], []>} : vector<16x64xf32>, vector<64x32xf32>, vector<16x32xf32> -> vector<16x32xf32>
    %216 = vector.broadcast %156 : vector<1x32xf32> to vector<16x32xf32>
    %217 = arith.addf %215, %216 : vector<16x32xf32>
    %218 = arith.addf %207, %217 : vector<16x32xf32>
    %cst_78 = arith.constant dense<0.000000e+00> : vector<16xf32>
    %219 = vector.multi_reduction <add>, %218, %cst_78 [1] : vector<16x32xf32> to vector<16xf32>
    %220 = vector.shape_cast %219 : vector<16xf32> to vector<16x1xf32>
    %cst_79 = arith.constant 3.200000e+01 : f32
    %221 = vector.broadcast %cst_79 : f32 to vector<16x1xf32>
    %222 = arith.divf %220, %221 : vector<16x1xf32>
    %223 = vector.broadcast %222 : vector<16x1xf32> to vector<16x32xf32>
    %224 = arith.subf %218, %223 : vector<16x32xf32>
    %225 = arith.mulf %224, %224 : vector<16x32xf32>
    %cst_80 = arith.constant dense<0.000000e+00> : vector<16xf32>
    %226 = vector.multi_reduction <add>, %225, %cst_80 [1] : vector<16x32xf32> to vector<16xf32>
    %227 = vector.shape_cast %226 : vector<16xf32> to vector<16x1xf32>
    %cst_81 = arith.constant 3.200000e+01 : f32
    %228 = vector.broadcast %cst_81 : f32 to vector<16x1xf32>
    %229 = arith.divf %227, %228 : vector<16x1xf32>
    %cst_82 = arith.constant 9.99999974E-6 : f32
    %230 = vector.broadcast %cst_82 : f32 to vector<16x1xf32>
    %231 = arith.addf %229, %230 : vector<16x1xf32>
    %232 = math.rsqrt %231 : vector<16x1xf32>
    %233 = vector.broadcast %232 : vector<16x1xf32> to vector<16x32xf32>
    %234 = arith.mulf %224, %233 : vector<16x32xf32>
    %235 = vector.broadcast %159 : vector<1x32xf32> to vector<16x32xf32>
    %236 = arith.mulf %234, %235 : vector<16x32xf32>
    %237 = vector.broadcast %160 : vector<1x32xf32> to vector<16x32xf32>
    %238 = arith.addf %236, %237 : vector<16x32xf32>
    %c42 = arith.constant 42 : index
    %c0_83 = arith.constant 0 : index
    %239 = vector.load %arg1[%c42, %c0_83] : memref<48x32xf32, #tpu.memory_space<vmem>>, vector<1x32xf32>
    %c43 = arith.constant 43 : index
    %c0_84 = arith.constant 0 : index
    %240 = vector.load %arg1[%c43, %c0_84] : memref<48x32xf32, #tpu.memory_space<vmem>>, vector<1x32xf32>
    %cst_85 = arith.constant dense<0.000000e+00> : vector<16xf32>
    %241 = vector.multi_reduction <add>, %238, %cst_85 [1] : vector<16x32xf32> to vector<16xf32>
    %242 = vector.shape_cast %241 : vector<16xf32> to vector<16x1xf32>
    %cst_86 = arith.constant 3.200000e+01 : f32
    %243 = vector.broadcast %cst_86 : f32 to vector<16x1xf32>
    %244 = arith.divf %242, %243 : vector<16x1xf32>
    %245 = vector.broadcast %244 : vector<16x1xf32> to vector<16x32xf32>
    %246 = arith.subf %238, %245 : vector<16x32xf32>
    %247 = arith.mulf %246, %246 : vector<16x32xf32>
    %cst_87 = arith.constant dense<0.000000e+00> : vector<16xf32>
    %248 = vector.multi_reduction <add>, %247, %cst_87 [1] : vector<16x32xf32> to vector<16xf32>
    %249 = vector.shape_cast %248 : vector<16xf32> to vector<16x1xf32>
    %cst_88 = arith.constant 3.200000e+01 : f32
    %250 = vector.broadcast %cst_88 : f32 to vector<16x1xf32>
    %251 = arith.divf %249, %250 : vector<16x1xf32>
    %cst_89 = arith.constant 9.99999974E-6 : f32
    %252 = vector.broadcast %cst_89 : f32 to vector<16x1xf32>
    %253 = arith.addf %251, %252 : vector<16x1xf32>
    %254 = math.rsqrt %253 : vector<16x1xf32>
    %255 = vector.broadcast %254 : vector<16x1xf32> to vector<16x32xf32>
    %256 = arith.mulf %246, %255 : vector<16x32xf32>
    %257 = vector.broadcast %239 : vector<1x32xf32> to vector<16x32xf32>
    %258 = arith.mulf %256, %257 : vector<16x32xf32>
    %259 = vector.broadcast %240 : vector<1x32xf32> to vector<16x32xf32>
    %260 = arith.addf %258, %259 : vector<16x32xf32>
    %c0_90 = arith.constant 0 : index
    %c0_91 = arith.constant 0 : index
    %261 = vector.load %arg3[%c0_90, %c0_91] : memref<16x32xf32, #tpu.memory_space<vmem>>, vector<16x32xf32>
    tpu.vector_store %arg3[%c0_90, %c0_91], %260 {strides = array<i32>} : memref<16x32xf32, #tpu.memory_space<vmem>>, vector<16x32xf32>,
    return
  }
}

</mosaic_0001>

<bundles_post_ra>
// kernel: tpu_custom_call.1
= control target key start
LH: loop header
LB: loop body
LE: loop exit
PB: predicated region body
PF: predicated region fallthrough
CT: control target
= control target key end

     0   :  { %v2826_v1 = vmov 0   ;;  %s3540_s0 = inlined_call_operand.vmem [shape: s32[16,16], index: 0, kind: input, shape index: {}]   ;;  %s3541_s1 = inlined_call_operand.vmem [shape: f32[48,32], index: 1, kind: input, shape index: {}]   ;;  %s3542_s2 = inlined_call_operand.vmem [shape: f32[336,96], index: 2, kind: input, shape index: {}]   ;;  %s3543_s3 = inlined_call_operand.hbm [shape: f32[16,32], index: 3, kind: output, shape index: {}]  }
   0x1   :  { %v15_v0 = vld [vmem:[%s3540_s0] sm:$0xff]  ;;  %2641 = vset.pattern.permute.xlu0 %v2826_v1  ;;  %v33_v3 = vld [vmem:[%s3541_s1 + $0x8] sm:$0xff]  ;;  %v34_v4 = vld [vmem:[%s3541_s1 + $0x10] sm:$0xff] }
   0x2   :  { %v32_v2 = vld [vmem:[%s3541_s1] sm:$0xff]  ;;  %21 = vperm.xlu0 %2641, %v15_v0   ;;  %v35_v6 = vld [vmem:[%s3541_s1 + $0x18] sm:$0xff] }
   0x3   :  { %v2430_v5 = vpack.c.bf16 %v33_v3, %v32_v2 }
   0x4   :  { %8 = vsyncpa [#allocation3], 0  ;;  %v16_v7 = vld [vmem:[%s3540_s0 + $0x8] sm:$0xff]  ;;  %v2434_v8 = vpack.c.bf16 %v35_v6, %v34_v4  ;;  %v18_v9 = vlaneseq  ;;  %vm37_vm0 = vcmask 261120   ;;  %v2827_v12 = vmov 0.0   ;;  %v36_v16 = vld [vmem:[%s3541_s1 + $0x20] sm:$0xff] }
   0x5   :  { %2431 = vmatprep.subr.bf16.mxu0 %v2430_v5  ;;  %v278_v33 = vld [vmem:[%s3542_s2] sm:$0xff]  ;;  %v279_v34 = vld [vmem:[%s3542_s2 + $0x8] sm:$0xff]  ;;  %v280_v35 = vld [vmem:[%s3542_s2 + $0x10] sm:$0xff]  ;;  %s2828_s7 = smov 32   ;;  %s2829_s14 = smov 96  }
   0x6   :  { %2433 = vmatpush3.bf16.msra.mxu0 %v2430_v5  ;;  %24 = vperm.xlu0 %2641, %v16_v7   ;;  %v2876_v10 = vand.u32 127, %v18_v9  ;;  %v2438_v36 = vpack.c.bf16 %v279_v34, %v278_v33  ;;  %v281_v37 = vld [vmem:[%s3542_s2 + $0x18] sm:$0xff]  ;;  %v2911_v39 = vshrl.u32 %v18_v9, 7  ;;  %s2831_s17 = smov 48   ;;  %s2833_s18 = smov 64  }
   0x7   :  { %2435 = vmatprep.subr.bf16.mxu0 %v2434_v8  ;;  %v2442_v38 = vpack.c.bf16 %v281_v37, %v280_v35  ;;  %s2834_s16 = smov [#allocation2]  }
   0x8   :  { %2439 = vmatprep.subr.bf16.mxu1 %v2438_v36  ;;  %v2914_v40 = vadd.s32 8, %v2911_v39  ;;  %v2917_v41 = vshra.s32 %v2876_v10, 3  ;;  %v213_v42 = vshra.s32 %v2911_v39, 4  ;;  %v2922_v44 = vadd.s32 16, %v2911_v39 }
   0x9   :  { %2441 = vmatpush3.bf16.msra.mxu1 %v2438_v36  ;;  %v2925_v45 = vadd.s32 24, %v2911_v39  ;;  %v2928_v46 = vadd.s32 32, %v2911_v39  ;;  %v2931_v47 = vadd.s32 40, %v2911_v39  ;;  %v2934_v48 = vadd.s32 48, %v2911_v39 }
   0xa   :  { %2437 = vmatpush3.bf16.msra.mxu0 %v2434_v8  ;;  %2443 = vmatprep.subr.bf16.mxu1 %v2442_v38  ;;  %v214_v43 = vshra.s32 %v2914_v40, 4  ;;  %v2937_v49 = vadd.s32 56, %v2911_v39  ;;  %vm221_vm3 = vcmp.eq.s32.totalorder %v213_v42, %v2917_v41  ;;  %v215_v50 = vshra.s32 %v2922_v44, 4 }
   0xb   :  { %v216_v51 = vshra.s32 %v2925_v45, 4  ;;  %v1985_v52 = vsel %vm221_vm3, 1.0, %v2827_v12  ;;  %v217_v54 = vshra.s32 %v2928_v46, 4  ;;  %v218_v55 = vshra.s32 %v2931_v47, 4 }
   0xc   :  { %vm222_vm4 = vcmp.eq.s32.totalorder %v214_v43, %v2917_v41  ;;  %vm223_vm5 = vcmp.eq.s32.totalorder %v215_v50, %v2917_v41  ;;  %v219_v57 = vshra.s32 %v2934_v48, 4  ;;  %v220_v61 = vshra.s32 %v2937_v49, 4 }
   0xd   :  { %2445 = vmatpush3.bf16.msra.mxu1 %v2442_v38  ;;  %v1986_v53 = vsel %vm222_vm4, 1.0, %v2827_v12  ;;  %vm224_vm6 = vcmp.eq.s32.totalorder %v216_v51, %v2917_v41  ;;  %v1987_v58 = vsel %vm223_vm5, 1.0, %v2827_v12  ;;  %vm225_vm7 = vcmp.eq.s32.totalorder %v217_v54, %v2917_v41 }
   0xe   :  { %v2951_v56 = vpack.i.bf16 %v1986_v53, %v1985_v52  ;;  %v1988_v59 = vsel %vm224_vm6, 1.0, %v2827_v12  ;;  %vm226_vm8 = vcmp.eq.s32.totalorder %v218_v55, %v2917_v41  ;;  %v1989_v62 = vsel %vm225_vm7, 1.0, %v2827_v12 }
   0xf   :  { %v2970_v60 = vpack.i.bf16 %v1988_v59, %v1987_v58  ;;  %v1990_v63 = vsel %vm226_vm8, 1.0, %v2827_v12  ;;  %vm227_vm9 = vcmp.eq.s32.totalorder %v219_v57, %v2917_v41  ;;  %vm228_vm10 = vcmp.eq.s32.totalorder %v220_v61, %v2917_v41 }
  0x10   :  { %v2983_v0 = vpack.i.bf16 %v1990_v63, %v1989_v62  ;;  %v1991_v2 = vsel %vm227_vm9, 1.0, %v2827_v12  ;;  %v1992_v3 = vsel %vm228_vm10, 1.0, %v2827_v12  ;;  %vm199_vm3 = vcmask 130048  }
  0x11   :  { %v2989_v4 = vpack.i.bf16 %v1992_v3, %v1991_v2  ;;  %vm204_vm4 = vcmask 392192   ;;  %vm528_vm5 = vcmask 523264  }
  0x81   :  { %v22_v11 = vpop.permute.xlu0 %21 }
  0x82   :  { %vm26_vm1 = vcmp.eq.s32.totalorder %v22_v11, %v2876_v10 }
  0x83   :  { %v1979_v13 = vsel %vm26_vm1, 1.0, %v2827_v12 }
  0x84   :  { %2209 = vmatprep.mubr.msk.f32.mxu0 %vm37_vm0, %v1979_v13 }
  0x85   :  { %v25_v14 = vpop.permute.xlu0 %24 }
  0x86   :  { %vm27_vm2 = vcmp.eq.s32.totalorder %v25_v14, %v2876_v10  ;;  %v1983_v14 = vld [vmem:[%s3541_s1 + $0x28] ss:$0 sm:$0xff] }
  0x87   :  { %v1980_v15 = vsel %vm27_vm2, 1.0, %v2827_v12  ;;  %vm3077_vm2 = vmpackc.low %vm37_vm0, %vm37_vm0 }
  0x88   :  { %2210 = vmatmul.mubr.msk.f32.vlgmr.msra.gmra.mrb[0].mxu0 %vm37_vm0, %v1980_v15 }
 0x15b   :  { %v2211_v17 = vpop.f32.mrb[0].mxu0 }
 0x15c   :  { %v110_v18 = vpop.f32.mrb[1].mxu0  ;;  %v116_v20 = vadd.f32 %v2211_v17, %v36_v16 }
 0x15d   :  { %v111_v19 = vadd.f32 %v110_v18, %v36_v16  ;;  %v1984_v16 = vld [vmem:[%s3541_s1 + $0x29] ss:$0 sm:$0xff] }
 0x15e   :  { %v124_v22 = vsel %vm37_vm0, %v116_v20, 0.0 }
 0x15f   :  { %v121_v21 = vsel %vm37_vm0, %v111_v19, 0.0 }
 0x160   :  { %122 = vadd.xlane.f32.xlu1 %v121_v21 }
 0x164   :  { %125 = vadd.xlane.f32.xlu1 %v124_v22 }
 0x1ed   :  { %v123_v23 = vpop.xlane.xlu1 %122 }
 0x1ee   :  { %v128_v24 = vmul.f32 0.03125, %v123_v23 }
 0x1f0   :  { %v2889_v25 = vsub.f32 %v111_v19, %v128_v24 }
 0x1f1   :  { %v126_v26 = vpop.xlane.xlu1 %125 }
 0x1f2   :  { %v129_v27 = vmul.f32 0.03125, %v126_v26  ;;  %v132_v28 = vmul.f32 %v2889_v25, %v2889_v25  ;;  %v2001_v26 = vld [vmem:[%s3542_s2 + $0xa0] ss:$0 sm:$0xff] }
 0x1f4   :  { %v2893_v29 = vsub.f32 %v116_v20, %v129_v27  ;;  %v134_v30 = vsel %vm37_vm0, %v132_v28, 0.0 }
 0x1f5   :  { %135 = vadd.xlane.f32.xlu0 %v134_v30 }
 0x1f6   :  { %v133_v31 = vmul.f32 %v2893_v29, %v2893_v29 }
 0x1f8   :  { %v137_v32 = vsel %vm37_vm0, %v133_v31, 0.0 }
 0x1f9   :  { %138 = vadd.xlane.f32.xlu1 %v137_v32 }
 0x20a   :  { %2643 = vrot.lane.b32.xlu1 %v2951_v56, %s2828_s7 }
 0x20e   :  { %2648 = vrot.lane.b32.xlu1 %v2970_v60, %s2828_s7 }
 0x212   :  { %2653 = vrot.lane.b32.xlu1 %v2983_v0, %s2828_s7 }
 0x216   :  { %2658 = vrot.lane.b32.xlu1 %v2989_v4, %s2828_s7 }
 0x282   :  { %v136_v5 = vpop.xlane.xlu0 %135 }
 0x283   :  { %v140_v6 = vmul.f32 0.03125, %v136_v5 }
 0x285   :  { %v142_v7 = vadd.f32 1e-05, %v140_v6 }
 0x286   :  { %v139_v8 = vpop.xlane.xlu1 %138 }
 0x287   :  { %2762 = vrsqrt.f32 %v142_v7  ;;  %v141_v9 = vmul.f32 0.03125, %v139_v8 }
 0x289   :  { %v143_v11 = vadd.f32 1e-05, %v141_v9  ;;  %v17_v9 = vld [vmem:[%s3540_s0] sm:$0x1]  ;;  %s2830_s0 = smov 16  }
 0x28a   :  { %v3009_v23 = vpop.permute.xlu1 %2643  ;;  %vm168_vm11 = vcmp.eq.s32.totalorder %v17_v9, 0 }
 0x28b   :  { %2764 = vrsqrt.f32 %v143_v11  ;;  %v2646_v27 = vunpack.i.h.bf16 %v3009_v23 }
 0x28e   :  { %v3011_v24 = vpop.permute.xlu1 %2648 }
 0x28f   :  { %v2651_v28 = vunpack.i.h.bf16 %v3011_v24  ;;  %v2650_v30 = vunpack.i.l.bf16 %v3011_v24 }
 0x291   :  { %v2763_v13 = vpop.eup %2762 }
 0x292   :  { %v146_v15 = vmul.f32 %v2763_v13, %v2889_v25  ;;  %v3013_v25 = vpop.permute.xlu1 %2653  ;;  %v172_v13 = vsub.s32 0, %v2911_v39 }
 0x293   :  { %v2656_v34 = vunpack.i.h.bf16 %v3013_v25  ;;  %v2655_v35 = vunpack.i.l.bf16 %v3013_v25 }
 0x294   :  { %v152_v17 = vmul.f32 %v1983_v14, %v146_v15  ;;  %v163_v15 = vshra.s32 %v2911_v39, 3 }
 0x295   :  { %v2765_v18 = vpop.eup %2764 }
 0x296   :  { %v147_v19 = vmul.f32 %v2765_v18, %v2893_v29  ;;  %v3001_v20 = vadd.f32 %v1984_v16, %v152_v17  ;;  %v2645_v29 = vunpack.i.l.bf16 %v3009_v23  ;;  %v3026_v36 = vpop.permute.xlu1 %2658  ;;  %v164_v17 = vshra.s32 %v2914_v40, 3 }
 0x297   :  { %v2661_v59 = vunpack.i.h.bf16 %v3026_v36  ;;  %v2660_v62 = vunpack.i.l.bf16 %v3026_v36  ;;  %vm166_vm12 = vcmp.ne.s32.totalorder %v163_v15, %v2917_v41 }
 0x298   :  { %v153_v21 = vmul.f32 %v1983_v14, %v147_v19  ;;  %2220 = vmatprep.mubr.msk.f32.mxu1 %vm37_vm0, %v3001_v20  ;;  %v169_v14 = vsel %vm168_vm11, 1, %v2826_v1  ;;  %vm167_vm14 = vcmp.ne.s32.totalorder %v164_v17, %v2917_v41 }
 0x29a   :  { %v3005_v22 = vadd.f32 %v1984_v16, %v153_v21  ;;  %v173_v16 = vrot.slane %v169_v14, %v172_v13 }
 0x29c   :  { %2221 = vmatmul.mubr.msk.f32.vlgmr.msra.gmra.mrb[0].mxu1 %vm37_vm0, %v3005_v22  ;;  %vm174_vm13 = vcmp.eq.s32.totalorder %v173_v16, 1 }
 0x29d   :  { %vm175_vm15 = vmor %vm166_vm12, %vm174_vm13 }
 0x29e   :  { %vm176_vm1 = vmor %vm167_vm14, %vm174_vm13  ;;  %v177_v18 = vsel %vm175_vm15, -1e+09, %v2827_v12 }
 0x29f   :  { %v178_v1 = vsel %vm176_vm1, -1e+09, %v2827_v12 }
 0x36f   :  { %v2222_v31 = vpop.f32.mrb[0].mxu1 }
 0x370   :  { %v3022_v32 = vadd.f32 %v2222_v31, %v2001_v26  ;;  %v358_v33 = vpop.f32.mrb[1].mxu1 }
 0x371   :  { %v3028_v37 = vadd.f32 %v2001_v26, %v358_v33 }
 0x372   :  { %v402_v38 = vmul.f32 %v2651_v28, %v3022_v32  ;;  %v400_v52 = vmul.f32 %v2646_v27, %v3022_v32  ;;  %v404_v5 = vmul.f32 %v2656_v34, %v3022_v32  ;;  %v406_v6 = vmul.f32 %v2661_v59, %v3022_v32 }
 0x373   :  { %2239 = vmatprep.mubr.msk.f32.mxu0 %vm37_vm0, %v3028_v37  ;;  %v401_v53 = vmul.f32 %v2650_v30, %v3028_v37  ;;  %v399_v58 = vmul.f32 %v2645_v29, %v3028_v37  ;;  %v403_v3 = vmul.f32 %v2655_v35, %v3028_v37  ;;  %v405_v8 = vmul.f32 %v2660_v62, %v3028_v37 }
 0x375   :  { %v2667_v63 = vpack.i.bf16 %v402_v38, %v401_v53  ;;  %v2662_v2 = vpack.i.bf16 %v400_v52, %v399_v58  ;;  %v2672_v7 = vpack.i.bf16 %v404_v5, %v403_v3  ;;  %v2677_v11 = vpack.i.bf16 %v406_v6, %v405_v8 }
 0x377   :  { %2668 = vrot.lane.b32.xlu1 %v2667_v63, %s2829_s14  ;;  %2663 = vrot.lane.b32.xlu0 %v2662_v2, %s2829_s14 }
 0x37b   :  { %2673 = vrot.lane.b32.xlu1 %v2672_v7, %s2829_s14  ;;  %187 = vrot.lane.b32.xlu0 %v177_v18, %s2828_s7 }
 0x37f   :  { %2678 = vrot.lane.b32.xlu1 %v2677_v11, %s2829_s14  ;;  %193 = vrot.lane.b32.xlu0 %v177_v18, %s2831_s17 }
 0x383   :  { %181 = vrot.lane.b32.xlu1 %v177_v18, %s2830_s0 }
 0x387   :  { %183 = vrot.lane.b32.xlu1 %v178_v1, %s2830_s0  ;;  %s1968_s0 = sshll.u32 %s2834_s16, 4  ;;  %s1969_s0 = int_to_ptr.vmem [resolvable:$true] %s1968_s0 }
 0x388   :  { %p2807_p1 = scmp.lt.s32.totalorder %s1969_s0, %s1969_s0 }
 0x38b   :  { %189 = vrot.lane.b32.xlu1 %v178_v1, %s2828_s7 }
 0x38f   :  { %195 = vrot.lane.b32.xlu1 %v178_v1, %s2831_s17  ;;  %s2802_s17 = scalar_lea.vmem %s1969_s0, 256 }
 0x390   :  { %p2803_p0 = scmp.ne.s32.totalorder %s1969_s0, %s2802_s17  ;;  %p2808_p2 = scmp.lt.s32.totalorder %s2802_s17, %s2802_s17 }
 0x392   :  { %p2809_p3 = por %p2808_p2, %p2807_p1 }
 0x394   :  { %p2810_p4 = pnand %p2809_p3, %p2803_p0 }
 0x3e9   :  { %v2669_v19 = vpop.permute.xlu1 %2668  ;;  %v2664_v21 = vpop.permute.xlu0 %2663 }
 0x3ea   :  { %v2671_v26 = vunpack.i.h.bf16 %v2669_v19  ;;  %v2670_v41 = vunpack.i.l.bf16 %v2669_v19  ;;  %v2666_v31 = vunpack.i.h.bf16 %v2664_v21  ;;  %v2665_v33 = vunpack.i.l.bf16 %v2664_v21 }
 0x3ec   :  { %v2446_v52 = vpack.c.bf16 %v2666_v31, %v2665_v33  ;;  %v2452_v12 = vpack.c.bf16 %v2671_v26, %v2670_v41 }
 0x3ed   :  { %v2674_v53 = vpop.permute.xlu1 %2673  ;;  %v188_v13 = vpop.permute.xlu0 %187 }
 0x3ee   :  { %2448 = vmatprep.subr.msk.bf16.mxu0 %vm3077_vm2, %v2446_v52  ;;  %v2676_v58 = vunpack.i.h.bf16 %v2674_v53  ;;  %v2675_v63 = vunpack.i.l.bf16 %v2674_v53  ;;  %v245_v53 = vshra.s32 %v2876_v10, 4 }
 0x3ef   :  { %2451 = vmatpush3.bf16.xpose.msk.msra.mxu0 %vm3077_vm2, %v2446_v52 }
 0x3f0   :  { %2454 = vmatprep.subr.msk.bf16.mxu0 %vm3077_vm2, %v2452_v12  ;;  %v2458_v2 = vpack.c.bf16 %v2676_v58, %v2675_v63  ;;  %vm246_vm6 = vcmp.eq.s32.totalorder %v213_v42, %v245_v53  ;;  %vm247_vm7 = vcmp.eq.s32.totalorder %v214_v43, %v245_v53  ;;  %v2832_v63 = vmov 1.0|1.0   ;;  %v2034_v58 = vld [vmem:[%s3542_s2 + $0xa3] ss:$0 sm:$0xff] }
 0x3f1   :  { %v2679_v3 = vpop.permute.xlu1 %2678  ;;  %v194_v21 = vpop.permute.xlu0 %193  ;;  %vm3114_vm8 = vmpackc.low %vm247_vm7, %vm246_vm6  ;;  %vm248_vm9 = vcmp.eq.s32.totalorder %v215_v50, %v245_v53  ;;  %vm249_vm10 = vcmp.eq.s32.totalorder %v216_v51, %v245_v53  ;;  %vm250_vm12 = vcmp.eq.s32.totalorder %v217_v54, %v245_v53  ;;  %vm251_vm13 = vcmp.eq.s32.totalorder %v218_v55, %v245_v53 }
 0x3f2   :  { %v2681_v5 = vunpack.i.h.bf16 %v2679_v3  ;;  %v2680_v6 = vunpack.i.l.bf16 %v2679_v3  ;;  %2471 = vmatprep.subr.msk.bf16.mxu1 %vm3114_vm8, %v2832_v63  ;;  %vm3130_vm11 = vmpackc.low %vm249_vm10, %vm248_vm9  ;;  %vm252_vm15 = vcmp.eq.s32.totalorder %v219_v57, %v245_v53  ;;  %vm253_vm1 = vcmp.eq.s32.totalorder %v220_v61, %v245_v53 }
 0x3f3   :  { %2473 = vmatpush3.bf16.msk.msra.mxu1 %vm3114_vm8, %v2832_v63  ;;  %vm3146_vm14 = vmpackc.low %vm251_vm13, %vm250_vm12 }
 0x3f4   :  { %v2464_v7 = vpack.c.bf16 %v2681_v5, %v2680_v6  ;;  %2475 = vmatprep.subr.msk.bf16.mxu1 %vm3130_vm11, %v2832_v63 }
 0x3f5   :  { %v182_v8 = vpop.permute.xlu1 %181 }
 0x3f6   :  { %v200_v15 = vsel %vm199_vm3, %v177_v18, %v182_v8 }
 0x3f7   :  { %2457 = vmatpush3.bf16.xpose.msk.msra.mxu0 %vm3077_vm2, %v2452_v12  ;;  %v202_v19 = vsel %vm37_vm0, %v200_v15, %v188_v13  ;;  %2477 = vmatpush3.bf16.msk.msra.mxu1 %vm3130_vm11, %v2832_v63 }
 0x3f8   :  { %2460 = vmatprep.subr.msk.bf16.mxu0 %vm3077_vm2, %v2458_v2  ;;  %v3104_v33 = vsel %vm204_vm4, %v202_v19, %v194_v21  ;;  %2479 = vmatprep.subr.msk.bf16.mxu1 %vm3146_vm14, %v2832_v63  ;;  %v773_v21 = vld [vmem:[%s3542_s2 + $0x30] sm:$0xff] }
 0x3f9   :  { %v184_v9 = vpop.permute.xlu1 %183 }
 0x3fa   :  { %v201_v14 = vsel %vm199_vm3, %v178_v1, %v184_v9  ;;  %vm3162_vm3 = vmpackc.low %vm253_vm1, %vm252_vm15 }
 0x3fb   :  { %2481 = vmatpush3.bf16.msk.msra.mxu1 %vm3146_vm14, %v2832_v63 }
 0x3fc   :  { %2483 = vmatprep.subr.msk.bf16.mxu1 %vm3162_vm3, %v2832_v63 }
 0x3fd   :  { %v190_v11 = vpop.permute.xlu1 %189 }
 0x3fe   :  { %v203_v16 = vsel %vm37_vm0, %v201_v14, %v190_v11 }
 0x3ff   :  { %2463 = vmatpush3.bf16.xpose.msk.msra.mxu0 %vm3077_vm2, %v2458_v2  ;;  %2485 = vmatpush3.bf16.msk.msra.mxu1 %vm3162_vm3, %v2832_v63 }
 0x400   :  { %2466 = vmatprep.subr.msk.bf16.mxu0 %vm3077_vm2, %v2464_v7 }
 0x401   :  { %v196_v17 = vpop.permute.xlu1 %195 }
 0x402   :  { %v3101_v26 = vsel %vm204_vm4, %v203_v16, %v196_v17 }
 0x407   :  { %2469 = vmatpush3.bf16.xpose.msk.msra.mxu0 %vm3077_vm2, %v2464_v7 }
 0x40e   :  { %2240 = vmatmul.mubr.msk.f32.vlgmr.msra.gmra.mrb[2].mxu0 %vm37_vm0, %v3022_v32 }
 0x4e1   :  { %v2241_v41 = vpop.f32.mrb[2].mxu0 }
 0x4e2   :  { %v525_v31 = vadd.f32 %v2241_v41, %v3101_v26  ;;  %v519_v52 = vpop.f32.mrb[3].mxu0 }
 0x4e3   :  { %v520_v12 = vadd.f32 %v519_v52, %v3104_v33 }
 0x4e4   :  { %v532_v18 = vsel %vm528_vm5, %v525_v31, -inf }
 0x4e5   :  { %533 = vmax.xlane.f32.xlu1 %v532_v18  ;;  %v529_v1 = vsel %vm528_vm5, %v520_v12, -inf }
 0x4e6   :  { %530 = vmax.xlane.f32.xlu0 %v529_v1 }
 0x4f6   :  { %2688 = vrot.lane.b32.xlu1 %v2970_v60, %s2833_s18 }
 0x4fa   :  { %2698 = vrot.lane.b32.xlu1 %v2989_v4, %s2833_s18 }
 0x4fc   :  { %2683 = vrot.lane.b32.xlu0 %v2951_v56, %s2833_s18 }
 0x500   :  { %2693 = vrot.lane.b32.xlu0 %v2983_v0, %s2833_s18 }
 0x572   :  { %v534_v42 = vpop.xlane.xlu1 %533 }
 0x573   :  { %v536_v43 = vsub.f32 %v525_v31, %v534_v42  ;;  %v531_v44 = vpop.xlane.xlu0 %530  ;;  %v774_v31 = vld [vmem:[%s3542_s2 + $0x38] sm:$0xff] }
 0x574   :  { %v535_v45 = vsub.f32 %v520_v12, %v531_v44  ;;  %v2506_v52 = vpack.c.bf16 %v774_v31, %v773_v21  ;;  %v2026_v21 = vld [vmem:[%s3542_s2 + $0xa1] ss:$0 sm:$0xff] }
 0x575   :  { %v539_v46 = vmul.f32 1.442695, %v536_v43 }
 0x576   :  { %v537_v47 = vmul.f32 1.442695, %v535_v45  ;;  %v3174_v48 = vpop.permute.xlu1 %2688 }
 0x577   :  { %v2691_v49 = vunpack.i.h.bf16 %v3174_v48  ;;  %v2690_v50 = vunpack.i.l.bf16 %v3174_v48  ;;  %v3178_v51 = vpop.permute.xlu0 %2683 }
 0x578   :  { %2766 = vpow2.f32 %v537_v47  ;;  %v2686_v54 = vunpack.i.h.bf16 %v3178_v51  ;;  %v2685_v55 = vunpack.i.l.bf16 %v3178_v51 }
 0x579   :  { %2768 = vpow2.f32 %v539_v46  ;;  %v653_v56 = vmul.f32 %v2691_v49, %v3022_v32  ;;  %v652_v57 = vmul.f32 %v2690_v50, %v3028_v37 }
 0x57a   :  { %v651_v60 = vmul.f32 %v2686_v54, %v3022_v32  ;;  %v650_v61 = vmul.f32 %v2685_v55, %v3028_v37  ;;  %v3194_v0 = vpop.permute.xlu1 %2698 }
 0x57b   :  { %v2701_v4 = vunpack.i.h.bf16 %v3194_v0  ;;  %v2700_v2 = vunpack.i.l.bf16 %v3194_v0  ;;  %v3198_v3 = vpop.permute.xlu0 %2693  ;;  %v2707_v5 = vpack.i.bf16 %v653_v56, %v652_v57 }
 0x57c   :  { %v2696_v6 = vunpack.i.h.bf16 %v3198_v3  ;;  %v2695_v7 = vunpack.i.l.bf16 %v3198_v3  ;;  %v2702_v8 = vpack.i.bf16 %v651_v60, %v650_v61 }
 0x57d   :  { %v657_v9 = vmul.f32 %v2701_v4, %v3022_v32  ;;  %v656_v11 = vmul.f32 %v2700_v2, %v3028_v37  ;;  %2708 = vrot.lane.b32.xlu1 %v2707_v5, %s2833_s18 }
 0x57e   :  { %v655_v13 = vmul.f32 %v2696_v6, %v3022_v32  ;;  %v654_v14 = vmul.f32 %v2695_v7, %v3028_v37  ;;  %2703 = vrot.lane.b32.xlu0 %v2702_v8, %s2833_s18  ;;  %v771_v32 = vld [vmem:[%s3542_s2 + $0x20] sm:$0xff]  ;;  %v772_v37 = vld [vmem:[%s3542_s2 + $0x28] sm:$0xff] }
 0x57f   :  { %v2717_v15 = vpack.i.bf16 %v657_v9, %v656_v11  ;;  %v2502_v41 = vpack.c.bf16 %v772_v37, %v771_v32 }
 0x580   :  { %v2712_v16 = vpack.i.bf16 %v655_v13, %v654_v14 }
 0x581   :  { %2718 = vrot.lane.b32.xlu1 %v2717_v15, %s2833_s18  ;;  %2503 = vmatprep.subr.bf16.mxu0 %v2502_v41 }
 0x582   :  { %v2767_v17 = vpop.eup %2766  ;;  %2713 = vrot.lane.b32.xlu0 %v2712_v16, %s2833_s18  ;;  %2505 = vmatpush3.bf16.msra.mxu0 %v2502_v41 }
 0x583   :  { %v2769_v19 = vpop.eup %2768  ;;  %2258 = vmatprep.mubr.msk.f32.mxu1 %vm528_vm5, %v2767_v17  ;;  %2507 = vmatprep.subr.bf16.mxu0 %v2506_v52 }
 0x584   :  { %2259 = vmatmul.mubr.msk.f32.vlgmr.msra.gmra.mrb[2].mxu1 %vm528_vm5, %v2769_v19 }
 0x586   :  { %2509 = vmatpush3.bf16.msra.mxu0 %v2506_v52 }
 0x5ef   :  { %v2709_v12 = vpop.permute.xlu1 %2708 }
 0x5f0   :  { %v2704_v18 = vpop.permute.xlu0 %2703  ;;  %v2711_v1 = vunpack.i.h.bf16 %v2709_v12  ;;  %v2710_v53 = vunpack.i.l.bf16 %v2709_v12 }
 0x5f1   :  { %v2706_v42 = vunpack.i.h.bf16 %v2704_v18  ;;  %v2705_v43 = vunpack.i.l.bf16 %v2704_v18 }
 0x5f2   :  { %v2490_v46 = vpack.c.bf16 %v2711_v1, %v2710_v53 }
 0x5f3   :  { %v2486_v44 = vpack.c.bf16 %v2706_v42, %v2705_v43  ;;  %v2719_v57 = vpop.permute.xlu1 %2718 }
 0x5f4   :  { %v2714_v45 = vpop.permute.xlu0 %2713  ;;  %v2721_v60 = vunpack.i.h.bf16 %v2719_v57  ;;  %v2720_v61 = vunpack.i.l.bf16 %v2719_v57 }
 0x5f5   :  { %v2716_v47 = vunpack.i.h.bf16 %v2714_v45  ;;  %v2715_v56 = vunpack.i.l.bf16 %v2714_v45  ;;  %2487 = vmatprep.subr.bf16.mxu1 %v2486_v44 }
 0x5f6   :  { %2489 = vmatpush3.bf16.msra.mxu1 %v2486_v44  ;;  %v2498_v8 = vpack.c.bf16 %v2721_v60, %v2720_v61  ;;  %v901_v60 = vld [vmem:[%s3542_s2 + $0x48] sm:$0xff] }
 0x5f7   :  { %2491 = vmatprep.subr.bf16.mxu1 %v2490_v46  ;;  %v2494_v5 = vpack.c.bf16 %v2716_v47, %v2715_v56 }
 0x5fa   :  { %2493 = vmatpush3.bf16.msra.mxu1 %v2490_v46 }
 0x5fb   :  { %2495 = vmatprep.subr.bf16.mxu1 %v2494_v5 }
 0x5fe   :  { %2497 = vmatpush3.bf16.msra.mxu1 %v2494_v5  ;;  %v902_v5 = vld [vmem:[%s3542_s2 + $0x50] sm:$0xff] }
 0x5ff   :  { %2499 = vmatprep.subr.bf16.mxu1 %v2498_v8 }
 0x602   :  { %2501 = vmatpush3.bf16.msra.mxu1 %v2498_v8  ;;  %v903_v8 = vld [vmem:[%s3542_s2 + $0x58] sm:$0xff] }
 0x657   :  { %v2260_v9 = vpop.f32.mrb[2].mxu1 }
 0x658   :  { %2770 = vrcp.f32 %v2260_v9  ;;  %v613_v11 = vpop.f32.mrb[3].mxu1  ;;  %v2514_v9 = vpack.c.bf16 %v903_v8, %v902_v5 }
 0x659   :  { %2772 = vrcp.f32 %v613_v11  ;;  %v991_v11 = vld [vmem:[%s3542_s2 + $0x60] sm:$0xff] }
 0x662   :  { %v2771_v13 = vpop.eup %2770 }
 0x663   :  { %v2773_v14 = vpop.eup %2772  ;;  %v625_v16 = vmul.f32 %v2771_v13, %v2769_v19  ;;  %v992_v13 = vld [vmem:[%s3542_s2 + $0x68] sm:$0xff] }
 0x664   :  { %v624_v15 = vmul.f32 %v2773_v14, %v2767_v17  ;;  %v993_v14 = vld [vmem:[%s3542_s2 + $0x70] sm:$0xff] }
 0x666   :  { %2277 = vmatprep.mubr.msk.f32.mxu1 %vm528_vm5, %v624_v15  ;;  %v2518_v15 = vpack.c.bf16 %v992_v13, %v991_v11 }
 0x667   :  { %2278 = vmatmul.mubr.msk.f32.vlgmr.msra.gmra.mrb[4].mxu1 %vm528_vm5, %v625_v16  ;;  %v994_v16 = vld [vmem:[%s3542_s2 + $0x78] sm:$0xff] }
 0x668   :  { %2519 = vmatprep.subr.bf16.mxu0 %v2518_v15 }
 0x73a   :  { %v2279_v32 = vpop.f32.mrb[4].mxu1 }
 0x73b   :  { %v762_v37 = vpop.f32.mrb[5].mxu1 }
 0x73c   :  { %2288 = vmatprep.mubr.msk.f32.mxu0 %vm37_vm0, %v762_v37  ;;  %v995_v37 = vld [vmem:[%s3542_s2 + $0x80] sm:$0xff] }
 0x73d   :  { %2289 = vmatmul.mubr.msk.f32.vlgmr.msra.gmra.mrb[4].mxu0 %vm37_vm0, %v2279_v32  ;;  %v2522_v32 = vpack.c.bf16 %v994_v16, %v993_v14 }
 0x73e   :  { %2521 = vmatpush3.bf16.msra.mxu0 %v2518_v15 }
 0x73f   :  { %2523 = vmatprep.subr.bf16.mxu0 %v2522_v32 }
 0x742   :  { %2525 = vmatpush3.bf16.msra.mxu0 %v2522_v32 }
 0x810   :  { %v2290_v41 = vpop.f32.mrb[4].mxu0 }
 0x811   :  { %v857_v31 = vadd.f32 %v2290_v41, %v2026_v21  ;;  %v851_v52 = vpop.f32.mrb[5].mxu0 }
 0x812   :  { %v852_v12 = vadd.f32 %v2026_v21, %v851_v52  ;;  %v996_v21 = vld [vmem:[%s3542_s2 + $0x88] sm:$0xff] }
 0x813   :  { %v861_v17 = vadd.f32 %v857_v31, %v3005_v22  ;;  %v2526_v41 = vpack.c.bf16 %v996_v21, %v995_v37 }
 0x814   :  { %v860_v19 = vadd.f32 %v852_v12, %v3001_v20  ;;  %v900_v20 = vld [vmem:[%s3542_s2 + $0x40] sm:$0xff] }
 0x815   :  { %v865_v18 = vsel %vm37_vm0, %v861_v17, 0.0  ;;  %v2510_v61 = vpack.c.bf16 %v901_v60, %v900_v20  ;;  %2527 = vmatprep.subr.bf16.mxu0 %v2526_v41  ;;  %v997_v60 = vld [vmem:[%s3542_s2 + $0x90] sm:$0xff] }
 0x816   :  { %866 = vadd.xlane.f32.xlu1 %v865_v18  ;;  %v862_v1 = vsel %vm37_vm0, %v860_v19, 0.0  ;;  %2529 = vmatpush3.bf16.msra.mxu0 %v2526_v41 }
 0x817   :  { %863 = vadd.xlane.f32.xlu0 %v862_v1  ;;  %2511 = vmatprep.subr.bf16.mxu1 %v2510_v61 }
 0x818   :  { %2513 = vmatpush3.bf16.msra.mxu1 %v2510_v61 }
 0x819   :  { %2515 = vmatprep.subr.bf16.mxu1 %v2514_v9 }
 0x81c   :  { %2517 = vmatpush3.bf16.msra.mxu1 %v2514_v9 }
 0x8a3   :  { %v867_v53 = vpop.xlane.xlu1 %866 }
 0x8a4   :  { %v869_v42 = vmul.f32 0.03125, %v867_v53  ;;  %v864_v43 = vpop.xlane.xlu0 %863  ;;  %v2029_v53 = vld [vmem:[%s3542_s2 + $0xa4] ss:$0 sm:$0xff] }
 0x8a5   :  { %v868_v44 = vmul.f32 0.03125, %v864_v43  ;;  %v2030_v43 = vld [vmem:[%s3542_s2 + $0xa5] ss:$0 sm:$0xff] }
 0x8a6   :  { %v871_v45 = vsub.f32 %v861_v17, %v869_v42 }
 0x8a7   :  { %v870_v46 = vsub.f32 %v860_v19, %v868_v44 }
 0x8a8   :  { %v873_v57 = vmul.f32 %v871_v45, %v871_v45 }
 0x8a9   :  { %v872_v47 = vmul.f32 %v870_v46, %v870_v46 }
 0x8aa   :  { %v877_v22 = vsel %vm37_vm0, %v873_v57, 0.0 }
 0x8ab   :  { %v874_v56 = vsel %vm37_vm0, %v872_v47, 0.0 }
 0x8ac   :  { %875 = vadd.xlane.f32.xlu0 %v874_v56 }
 0x8b0   :  { %878 = vadd.xlane.f32.xlu0 %v877_v22 }
 0x939   :  { %v876_v31 = vpop.xlane.xlu0 %875 }
 0x93a   :  { %v880_v52 = vmul.f32 0.03125, %v876_v31 }
 0x93c   :  { %v882_v12 = vadd.f32 1e-05, %v880_v52 }
 0x93d   :  { %v879_v17 = vpop.xlane.xlu0 %878 }
 0x93e   :  { %2774 = vrsqrt.f32 %v882_v12  ;;  %v881_v19 = vmul.f32 0.03125, %v879_v17 }
 0x940   :  { %v883_v18 = vadd.f32 1e-05, %v881_v19 }
 0x942   :  { %2776 = vrsqrt.f32 %v883_v18 }
 0x948   :  { %v2775_v1 = vpop.eup %2774 }
 0x949   :  { %v886_v42 = vmul.f32 %v2775_v1, %v870_v46  ;;  %v998_v46 = vld [vmem:[%s3542_s2 + $0x98] sm:$0xff] }
 0x94a   :  { %v2530_v61 = vpack.c.bf16 %v998_v46, %v997_v60 }
 0x94b   :  { %v892_v44 = vmul.f32 %v2029_v53, %v886_v42  ;;  %v1132_v42 = vld [vmem:[%s3542_s2 + $0xa8] sm:$0xff] }
 0x94c   :  { %v2777_v47 = vpop.eup %2776  ;;  %2531 = vmatprep.subr.bf16.mxu0 %v2530_v61 }
 0x94d   :  { %v887_v56 = vmul.f32 %v2777_v47, %v871_v45  ;;  %v898_v57 = vadd.f32 %v2030_v43, %v892_v44  ;;  %2533 = vmatpush3.bf16.msra.mxu0 %v2530_v61  ;;  %v2031_v45 = vld [vmem:[%s3542_s2 + $0xa2] ss:$0 sm:$0xff]  ;;  %v1134_v47 = vld [vmem:[%s3542_s2 + $0xb8] sm:$0xff] }
 0x94e   :  { %2567 = vmatprep.subr.msk.bf16.mxu0 %vm3114_vm8, %v2832_v63 }
 0x94f   :  { %v893_v22 = vmul.f32 %v2029_v53, %v887_v56  ;;  %2299 = vmatprep.mubr.msk.f32.mxu1 %vm37_vm0, %v898_v57  ;;  %v1135_v56 = vld [vmem:[%s3542_s2 + $0xc0] sm:$0xff] }
 0x951   :  { %v899_v20 = vadd.f32 %v2030_v43, %v893_v22  ;;  %v1133_v43 = vld [vmem:[%s3542_s2 + $0xb0] sm:$0xff] }
 0x952   :  { %v2534_v44 = vpack.c.bf16 %v1133_v43, %v1132_v42 }
 0x953   :  { %2300 = vmatmul.mubr.msk.f32.vlgmr.msra.gmra.mrb[6].mxu1 %vm37_vm0, %v899_v20 }
 0x954   :  { %2535 = vmatprep.subr.bf16.mxu1 %v2534_v44 }
 0x955   :  { %2537 = vmatpush3.bf16.msra.mxu1 %v2534_v44 }
 0xa26   :  { %v2301_v5 = vpop.f32.mrb[6].mxu1 }
 0xa27   :  { %v986_v8 = vadd.f32 %v2301_v5, %v2031_v45  ;;  %v980_v9 = vpop.f32.mrb[7].mxu1 }
 0xa28   :  { %v981_v11 = vadd.f32 %v2031_v45, %v980_v9 }
 0xa29   :  { %v990_v14 = vmax.f32 %v986_v8, 0.0  ;;  %v2037_v8 = vld [vmem:[%s3542_s2 + $0xa6] ss:$0 sm:$0xff] }
 0xa2a   :  { %v989_v13 = vmax.f32 %v981_v11, 0.0 }
 0xa2c   :  { %2318 = vmatprep.mubr.msk.f32.mxu0 %vm528_vm5, %v989_v13 }
 0xa2d   :  { %2319 = vmatmul.mubr.msk.f32.vlgmr.msra.gmra.mrb[6].mxu0 %vm528_vm5, %v990_v14  ;;  %v2038_v14 = vld [vmem:[%s3542_s2 + $0xa7] ss:$0 sm:$0xff] }
 0xa2e   :  { %2569 = vmatpush3.bf16.msk.msra.mxu0 %vm3114_vm8, %v2832_v63 }
 0xa2f   :  { %2571 = vmatprep.subr.msk.bf16.mxu0 %vm3130_vm11, %v2832_v63 }
 0xa32   :  { %2573 = vmatpush3.bf16.msk.msra.mxu0 %vm3130_vm11, %v2832_v63 }
 0xa33   :  { %2575 = vmatprep.subr.msk.bf16.mxu0 %vm3146_vm14, %v2832_v63 }
 0xa36   :  { %2577 = vmatpush3.bf16.msk.msra.mxu0 %vm3146_vm14, %v2832_v63 }
 0xa37   :  { %2579 = vmatprep.subr.msk.bf16.mxu0 %vm3162_vm3, %v2832_v63 }
 0xa3a   :  { %2581 = vmatpush3.bf16.msk.msra.mxu0 %vm3162_vm3, %v2832_v63 }
 0xb00   :  { %v2320_v10 = vpop.f32.mrb[6].mxu0 }
 0xb01   :  { %v1081_v15 = vadd.f32 %v2320_v10, %v2034_v58  ;;  %v1075_v16 = vpop.f32.mrb[7].mxu0 }
 0xb02   :  { %v1076_v32 = vadd.f32 %v2034_v58, %v1075_v16 }
 0xb03   :  { %v1085_v37 = vadd.f32 %v1081_v15, %v899_v20 }
 0xb04   :  { %v1084_v21 = vadd.f32 %v1076_v32, %v898_v57  ;;  %v2538_v57 = vpack.c.bf16 %v1135_v56, %v1134_v47  ;;  %v2039_v32 = vld [vmem:[%s3542_s2 + $0x148] ss:$0 sm:$0xff] }
 0xb05   :  { %v1089_v39 = vsel %vm37_vm0, %v1085_v37, 0.0 }
 0xb06   :  { %1090 = vadd.xlane.f32.xlu0 %v1089_v39  ;;  %v1086_v41 = vsel %vm37_vm0, %v1084_v21, 0.0  ;;  %2539 = vmatprep.subr.bf16.mxu1 %v2538_v57 }
 0xb07   :  { %1087 = vadd.xlane.f32.xlu1 %v1086_v41  ;;  %2541 = vmatpush3.bf16.msra.mxu1 %v2538_v57 }
 0xb93   :  { %v1091_v31 = vpop.xlane.xlu0 %1090 }
 0xb94   :  { %v1093_v52 = vmul.f32 0.03125, %v1091_v31  ;;  %v1088_v40 = vpop.xlane.xlu1 %1087 }
 0xb95   :  { %v1092_v63 = vmul.f32 0.03125, %v1088_v40 }
 0xb96   :  { %v1095_v12 = vsub.f32 %v1085_v37, %v1093_v52 }
 0xb97   :  { %v1094_v17 = vsub.f32 %v1084_v21, %v1092_v63 }
 0xb98   :  { %v1097_v19 = vmul.f32 %v1095_v12, %v1095_v12 }
 0xb99   :  { %v1096_v18 = vmul.f32 %v1094_v17, %v1094_v17 }
 0xb9a   :  { %v1101_v1 = vsel %vm37_vm0, %v1097_v19, 0.0 }
 0xb9b   :  { %1102 = vadd.xlane.f32.xlu0 %v1101_v1  ;;  %v1098_v53 = vsel %vm37_vm0, %v1096_v18, 0.0 }
 0xb9c   :  { %1099 = vadd.xlane.f32.xlu1 %v1098_v53 }
 0xc28   :  { %v1103_v22 = vpop.xlane.xlu0 %1102 }
 0xc29   :  { %v1105_v20 = vmul.f32 0.03125, %v1103_v22  ;;  %v1100_v60 = vpop.xlane.xlu1 %1099 }
 0xc2a   :  { %v1104_v46 = vmul.f32 0.03125, %v1100_v60 }
 0xc2b   :  { %v1107_v61 = vadd.f32 1e-05, %v1105_v20 }
 0xc2c   :  { %v1106_v45 = vadd.f32 1e-05, %v1104_v46 }
 0xc2d   :  { %2778 = vrsqrt.f32 %v1107_v61 }
 0xc2e   :  { %2780 = vrsqrt.f32 %v1106_v45 }
 0xc37   :  { %v2779_v5 = vpop.eup %2778 }
 0xc38   :  { %v2781_v9 = vpop.eup %2780  ;;  %v1111_v11 = vmul.f32 %v2779_v5, %v1095_v12 }
 0xc39   :  { %v1110_v13 = vmul.f32 %v2781_v9, %v1094_v17 }
 0xc3a   :  { %v1117_v58 = vmul.f32 %v2037_v8, %v1111_v11 }
 0xc3b   :  { %v1116_v10 = vmul.f32 %v2037_v8, %v1110_v13 }
 0xc3c   :  { %v3345_v16 = vadd.f32 %v2038_v14, %v1117_v58 }
 0xc3d   :  { %v3343_v15 = vadd.f32 %v2038_v14, %v1116_v10 }
 0xc3f   :  { %2329 = vmatprep.mubr.msk.f32.mxu1 %vm37_vm0, %v3343_v15 }
 0xc40   :  { %2330 = vmatmul.mubr.msk.f32.vlgmr.msra.gmra.mrb[8].mxu1 %vm37_vm0, %v3345_v16 }
 0xd13   :  { %v2331_v37 = vpop.f32.mrb[8].mxu1 }
 0xd14   :  { %v3354_v21 = vadd.f32 %v2331_v37, %v2039_v32  ;;  %v1212_v39 = vpop.f32.mrb[9].mxu1 }
 0xd15   :  { %v1213_v41 = vadd.f32 %v2039_v32, %v1212_v39 }
 0xd16   :  { %v1224_v31 = vmul.f32 %v2651_v28, %v3354_v21  ;;  %v1222_v52 = vmul.f32 %v2646_v27, %v3354_v21  ;;  %v1226_v28 = vmul.f32 %v2656_v34, %v3354_v21  ;;  %v1228_v23 = vmul.f32 %v2661_v59, %v3354_v21 }
 0xd17   :  { %2348 = vmatprep.mubr.msk.f32.mxu1 %vm37_vm0, %v1213_v41  ;;  %v1223_v40 = vmul.f32 %v2650_v30, %v1213_v41  ;;  %v1221_v63 = vmul.f32 %v2645_v29, %v1213_v41  ;;  %v1225_v19 = vmul.f32 %v2655_v35, %v1213_v41  ;;  %v1227_v24 = vmul.f32 %v2660_v62, %v1213_v41 }
 0xd18   :  { %v1449_v5 = vmul.f32 %v2690_v50, %v1213_v41  ;;  %v1450_v38 = vmul.f32 %v2691_v49, %v3354_v21  ;;  %v1447_v9 = vmul.f32 %v2685_v55, %v1213_v41  ;;  %v1448_v50 = vmul.f32 %v2686_v54, %v3354_v21 }
 0xd19   :  { %v2727_v12 = vpack.i.bf16 %v1224_v31, %v1223_v40  ;;  %v2722_v17 = vpack.i.bf16 %v1222_v52, %v1221_v63  ;;  %v2732_v27 = vpack.i.bf16 %v1226_v28, %v1225_v19  ;;  %v2737_v29 = vpack.i.bf16 %v1228_v23, %v1227_v24  ;;  %v1569_v24 = vld [vmem:[%s3542_s2 + $0xd0] sm:$0xff]  ;;  %v1570_v23 = vld [vmem:[%s3542_s2 + $0xd8] sm:$0xff] }
 0xd1a   :  { %v2747_v8 = vpack.i.bf16 %v1450_v38, %v1449_v5  ;;  %v2742_v48 = vpack.i.bf16 %v1448_v50, %v1447_v9  ;;  %v1451_v49 = vmul.f32 %v2695_v7, %v1213_v41  ;;  %v1452_v0 = vmul.f32 %v2696_v6, %v3354_v21  ;;  %v1698_v50 = vld [vmem:[%s3542_s2 + $0xf0] sm:$0xff] }
 0xd1b   :  { %2728 = vrot.lane.b32.xlu0 %v2727_v12, %s2829_s14  ;;  %2723 = vrot.lane.b32.xlu1 %v2722_v17, %s2829_s14 }
 0xd1f   :  { %2733 = vrot.lane.b32.xlu1 %v2732_v27, %s2829_s14  ;;  %v1568_v27 = vld [vmem:[%s3542_s2 + $0xc8] sm:$0xff] }
 0xd23   :  { %2738 = vrot.lane.b32.xlu1 %v2737_v29, %s2829_s14  ;;  %v2598_v29 = vpack.c.bf16 %v1569_v24, %v1568_v27  ;;  %v1794_v27 = vld [vmem:[%s3542_s2 + $0x138] sm:$0xff]  ;;  %v1795_v24 = vld [vmem:[%s3542_s2 + $0x140] sm:$0xff] }
 0xd8d   :  { %v2729_v30 = vpop.permute.xlu0 %2728  ;;  %v2724_v25 = vpop.permute.xlu1 %2723 }
 0xd8e   :  { %v2731_v34 = vunpack.i.h.bf16 %v2729_v30  ;;  %v2730_v35 = vunpack.i.l.bf16 %v2729_v30  ;;  %v2726_v18 = vunpack.i.h.bf16 %v2724_v25  ;;  %v2725_v1 = vunpack.i.l.bf16 %v2724_v25  ;;  %v1571_v30 = vld [vmem:[%s3542_s2 + $0xe0] sm:$0xff] }
 0xd8f   :  { %v2602_v25 = vpack.c.bf16 %v1571_v30, %v1570_v23  ;;  %v2626_v23 = vpack.c.bf16 %v1795_v24, %v1794_v27  ;;  %v2077_v27 = vld [vmem:[%s3541_s1 + $0x2a] ss:$0 sm:$0xff] }
 0xd90   :  { %v2542_v53 = vpack.c.bf16 %v2726_v18, %v2725_v1  ;;  %v2548_v42 = vpack.c.bf16 %v2731_v34, %v2730_v35 }
 0xd91   :  { %v2734_v62 = vpop.permute.xlu1 %2733 }
 0xd92   :  { %2544 = vmatprep.subr.msk.bf16.mxu1 %vm3077_vm2, %v2542_v53  ;;  %v2736_v36 = vunpack.i.h.bf16 %v2734_v62  ;;  %v2735_v59 = vunpack.i.l.bf16 %v2734_v62 }
 0xd93   :  { %2547 = vmatpush3.bf16.xpose.msk.msra.mxu1 %vm3077_vm2, %v2542_v53 }
 0xd94   :  { %2550 = vmatprep.subr.msk.bf16.mxu1 %vm3077_vm2, %v2548_v42  ;;  %v2554_v43 = vpack.c.bf16 %v2736_v36, %v2735_v59  ;;  %v2064_v59 = vld [vmem:[%s3542_s2 + $0x149] ss:$0 sm:$0xff] }
 0xd95   :  { %v2739_v44 = vpop.permute.xlu1 %2738 }
 0xd96   :  { %v2741_v47 = vunpack.i.h.bf16 %v2739_v44  ;;  %v2740_v56 = vunpack.i.l.bf16 %v2739_v44 }
 0xd98   :  { %v2560_v57 = vpack.c.bf16 %v2741_v47, %v2740_v56 }
 0xd9b   :  { %2553 = vmatpush3.bf16.xpose.msk.msra.mxu1 %vm3077_vm2, %v2548_v42 }
 0xd9c   :  { %2556 = vmatprep.subr.msk.bf16.mxu1 %vm3077_vm2, %v2554_v43 }
 0xda3   :  { %2559 = vmatpush3.bf16.xpose.msk.msra.mxu1 %vm3077_vm2, %v2554_v43 }
 0xda4   :  { %2562 = vmatprep.subr.msk.bf16.mxu1 %vm3077_vm2, %v2560_v57 }
 0xdab   :  { %2565 = vmatpush3.bf16.xpose.msk.msra.mxu1 %vm3077_vm2, %v2560_v57 }
 0xdac   :  { %2599 = vmatprep.subr.bf16.mxu1 %v2598_v29 }
 0xdb2   :  { %2349 = vmatmul.mubr.msk.f32.vlgmr.msra.gmra.mrb[10].mxu1 %vm37_vm0, %v3354_v21 }
 0xdb3   :  { %2601 = vmatpush3.bf16.msra.mxu1 %v2598_v29  ;;  %v2069_v29 = vld [vmem:[%s3542_s2 + $0x14a] ss:$0 sm:$0xff] }
 0xdb4   :  { %2603 = vmatprep.subr.bf16.mxu1 %v2602_v25 }
 0xdb7   :  { %2605 = vmatpush3.bf16.msra.mxu1 %v2602_v25 }
 0xe85   :  { %v2350_v22 = vpop.f32.mrb[10].mxu1 }
 0xe86   :  { %v1347_v20 = vadd.f32 %v2350_v22, %v3101_v26  ;;  %v1341_v60 = vpop.f32.mrb[11].mxu1  ;;  %v1453_v26 = vmul.f32 %v2700_v2, %v1213_v41 }
 0xe87   :  { %v1342_v46 = vadd.f32 %v1341_v60, %v3104_v33  ;;  %v1454_v33 = vmul.f32 %v2701_v4, %v3354_v21  ;;  %v2752_v4 = vpack.i.bf16 %v1452_v0, %v1451_v49  ;;  %v1700_v49 = vld [vmem:[%s3542_s2 + $0x100] sm:$0xff] }
 0xe88   :  { %v1353_v61 = vsel %vm528_vm5, %v1347_v20, -inf }
 0xe89   :  { %1354 = vmax.xlane.f32.xlu1 %v1353_v61  ;;  %v1350_v45 = vsel %vm528_vm5, %v1342_v46, -inf  ;;  %v2757_v11 = vpack.i.bf16 %v1454_v33, %v1453_v26 }
 0xe8a   :  { %1351 = vmax.xlane.f32.xlu0 %v1350_v45 }
 0xe9a   :  { %2748 = vrot.lane.b32.xlu1 %v2747_v8, %s2833_s18 }
 0xe9e   :  { %2758 = vrot.lane.b32.xlu1 %v2757_v11, %s2833_s18  ;;  %v1699_v11 = vld [vmem:[%s3542_s2 + $0xf8] sm:$0xff] }
 0xe9f   :  { %v2610_v0 = vpack.c.bf16 %v1700_v49, %v1699_v11 }
 0xea0   :  { %2743 = vrot.lane.b32.xlu0 %v2742_v48, %s2833_s18 }
 0xea4   :  { %2753 = vrot.lane.b32.xlu0 %v2752_v4, %s2833_s18  ;;  %v1788_v4 = vld [vmem:[%s3542_s2 + $0x108] sm:$0xff] }
 0xf16   :  { %v1355_v55 = vpop.xlane.xlu1 %1354 }
 0xf17   :  { %v1357_v2 = vsub.f32 %v1347_v20, %v1355_v55  ;;  %v1352_v51 = vpop.xlane.xlu0 %1351  ;;  %v1789_v55 = vld [vmem:[%s3542_s2 + $0x110] sm:$0xff] }
 0xf18   :  { %v1356_v54 = vsub.f32 %v1342_v46, %v1352_v51  ;;  %v2614_v51 = vpack.c.bf16 %v1789_v55, %v1788_v4  ;;  %v2076_v4 = vld [vmem:[%s3542_s2 + $0x14f] ss:$0 sm:$0xff] }
 0xf19   :  { %v1360_v13 = vmul.f32 1.442695, %v1357_v2  ;;  %v1790_v2 = vld [vmem:[%s3542_s2 + $0x118] sm:$0xff] }
 0xf1a   :  { %v1358_v14 = vmul.f32 1.442695, %v1356_v54  ;;  %v2749_v3 = vpop.permute.xlu1 %2748  ;;  %v1791_v54 = vld [vmem:[%s3542_s2 + $0x120] sm:$0xff]  ;;  %2615 = vmatprep.subr.bf16.mxu1 %v2614_v51 }
 0xf1b   :  { %v2744_v58 = vpop.permute.xlu0 %2743  ;;  %v2751_v6 = vunpack.i.h.bf16 %v2749_v3  ;;  %v2750_v37 = vunpack.i.l.bf16 %v2749_v3 }
 0xf1c   :  { %2782 = vpow2.f32 %v1358_v14  ;;  %v2746_v10 = vunpack.i.h.bf16 %v2744_v58  ;;  %v2745_v32 = vunpack.i.l.bf16 %v2744_v58  ;;  %v1792_v14 = vld [vmem:[%s3542_s2 + $0x128] sm:$0xff]  ;;  %v1793_v58 = vld [vmem:[%s3542_s2 + $0x130] sm:$0xff] }
 0xf1d   :  { %2784 = vpow2.f32 %v1360_v13  ;;  %v2586_v31 = vpack.c.bf16 %v2751_v6, %v2750_v37  ;;  %v2618_v13 = vpack.c.bf16 %v1791_v54, %v1790_v2 }
 0xf1e   :  { %v2582_v7 = vpack.c.bf16 %v2746_v10, %v2745_v32  ;;  %v2759_v63 = vpop.permute.xlu1 %2758  ;;  %v2622_v10 = vpack.c.bf16 %v1793_v58, %v1792_v14 }
 0xf1f   :  { %v2754_v21 = vpop.permute.xlu0 %2753  ;;  %v2761_v12 = vunpack.i.h.bf16 %v2759_v63  ;;  %v2760_v17 = vunpack.i.l.bf16 %v2759_v63 }
 0xf20   :  { %2583 = vmatprep.subr.bf16.mxu0 %v2582_v7  ;;  %v2756_v52 = vunpack.i.h.bf16 %v2754_v21  ;;  %v2755_v40 = vunpack.i.l.bf16 %v2754_v21 }
 0xf21   :  { %v2594_v28 = vpack.c.bf16 %v2761_v12, %v2760_v17 }
 0xf22   :  { %v2590_v19 = vpack.c.bf16 %v2756_v52, %v2755_v40  ;;  %v2068_v52 = vld [vmem:[%s3542_s2 + $0x14d] ss:$0 sm:$0xff] }
 0xf26   :  { %v2783_v39 = vpop.eup %2782 }
 0xf27   :  { %v2785_v41 = vpop.eup %2784  ;;  %2367 = vmatprep.mubr.msk.f32.mxu0 %vm528_vm5, %v2783_v39 }
 0xf28   :  { %2368 = vmatmul.mubr.msk.f32.vlgmr.msra.gmra.mrb[8].mxu0 %vm528_vm5, %v2785_v41 }
 0xf29   :  { %2585 = vmatpush3.bf16.msra.mxu0 %v2582_v7 }
 0xf2a   :  { %2587 = vmatprep.subr.bf16.mxu0 %v2586_v31 }
 0xf2d   :  { %2589 = vmatpush3.bf16.msra.mxu0 %v2586_v31 }
 0xf2e   :  { %2591 = vmatprep.subr.bf16.mxu0 %v2590_v19 }
 0xf31   :  { %2593 = vmatpush3.bf16.msra.mxu0 %v2590_v19 }
 0xf32   :  { %2595 = vmatprep.subr.bf16.mxu0 %v2594_v28 }
 0xf35   :  { %2597 = vmatpush3.bf16.msra.mxu0 %v2594_v28 }
 0xffb   :  { %v2369_v34 = vpop.f32.mrb[8].mxu0 }
 0xffc   :  { %2786 = vrcp.f32 %v2369_v34  ;;  %v1434_v35 = vpop.f32.mrb[9].mxu0 }
 0xffd   :  { %2788 = vrcp.f32 %v1434_v35 }
0x1006   :  { %v2787_v18 = vpop.eup %2786 }
0x1007   :  { %v2789_v1 = vpop.eup %2788  ;;  %v1446_v42 = vmul.f32 %v2787_v18, %v2785_v41  ;;  %v2067_v41 = vld [vmem:[%s3542_s2 + $0x14c] ss:$0 sm:$0xff] }
0x1008   :  { %v1445_v53 = vmul.f32 %v2789_v1, %v2783_v39 }
0x100a   :  { %2386 = vmatprep.mubr.msk.f32.mxu0 %vm528_vm5, %v1445_v53  ;;  %v2072_v53 = vld [vmem:[%s3542_s2 + $0x14b] ss:$0 sm:$0xff] }
0x100b   :  { %2387 = vmatmul.mubr.msk.f32.vlgmr.msra.gmra.mrb[10].mxu0 %vm528_vm5, %v1446_v42 }
0x10de   :  { %v2388_v62 = vpop.f32.mrb[10].mxu0 }
0x10df   :  { %v1559_v36 = vpop.f32.mrb[11].mxu0 }
0x10e0   :  { %2397 = vmatprep.mubr.msk.f32.mxu1 %vm37_vm0, %v1559_v36 }
0x10e1   :  { %2398 = vmatmul.mubr.msk.f32.vlgmr.msra.gmra.mrb[12].mxu1 %vm37_vm0, %v2388_v62 }
0x10e2   :  { %2617 = vmatpush3.bf16.msra.mxu1 %v2614_v51 }
0x10e3   :  { %2619 = vmatprep.subr.bf16.mxu1 %v2618_v13 }
0x10e6   :  { %2621 = vmatpush3.bf16.msra.mxu1 %v2618_v13 }
0x10e7   :  { %2623 = vmatprep.subr.bf16.mxu1 %v2622_v10 }
0x10ea   :  { %2625 = vmatpush3.bf16.msra.mxu1 %v2622_v10 }
0x10eb   :  { %2627 = vmatprep.subr.bf16.mxu1 %v2626_v23 }
0x10ee   :  { %2629 = vmatpush3.bf16.msra.mxu1 %v2626_v23 }
0x11b4   :  { %v2399_v43 = vpop.f32.mrb[12].mxu1 }
0x11b5   :  { %v1654_v44 = vadd.f32 %v2399_v43, %v2064_v59  ;;  %v1648_v47 = vpop.f32.mrb[13].mxu1 }
0x11b6   :  { %v1649_v56 = vadd.f32 %v2064_v59, %v1648_v47 }
0x11b7   :  { %v1658_v57 = vadd.f32 %v1654_v44, %v3345_v16 }
0x11b8   :  { %v1657_v22 = vadd.f32 %v1649_v56, %v3343_v15  ;;  %v1697_v15 = vld [vmem:[%s3542_s2 + $0xe8] sm:$0xff] }
0x11b9   :  { %v1662_v20 = vsel %vm37_vm0, %v1658_v57, 0.0  ;;  %v2606_v48 = vpack.c.bf16 %v1698_v50, %v1697_v15 }
0x11ba   :  { %1663 = vadd.xlane.f32.xlu1 %v1662_v20  ;;  %v1659_v60 = vsel %vm37_vm0, %v1657_v22, 0.0 }
0x11bb   :  { %1660 = vadd.xlane.f32.xlu0 %v1659_v60  ;;  %2607 = vmatprep.subr.bf16.mxu0 %v2606_v48 }
0x11bc   :  { %2609 = vmatpush3.bf16.msra.mxu0 %v2606_v48  ;;  %v2075_v48 = vld [vmem:[%s3542_s2 + $0x14e] ss:$0 sm:$0xff] }
0x11bd   :  { %2611 = vmatprep.subr.bf16.mxu0 %v2610_v0 }
0x11c0   :  { %2613 = vmatpush3.bf16.msra.mxu0 %v2610_v0 }
0x1247   :  { %v1664_v46 = vpop.xlane.xlu1 %1663 }
0x1248   :  { %v1666_v61 = vmul.f32 0.03125, %v1664_v46  ;;  %v1661_v45 = vpop.xlane.xlu0 %1660 }
0x1249   :  { %v1665_v5 = vmul.f32 0.03125, %v1661_v45 }
0x124a   :  { %v1668_v38 = vsub.f32 %v1658_v57, %v1666_v61 }
0x124b   :  { %v1667_v8 = vsub.f32 %v1657_v22, %v1665_v5 }
0x124c   :  { %v1670_v9 = vmul.f32 %v1668_v38, %v1668_v38 }
0x124d   :  { %v1669_v26 = vmul.f32 %v1667_v8, %v1667_v8 }
0x124e   :  { %v1674_v16 = vsel %vm37_vm0, %v1670_v9, 0.0 }
0x124f   :  { %v1671_v33 = vsel %vm37_vm0, %v1669_v26, 0.0 }
0x1250   :  { %1672 = vadd.xlane.f32.xlu0 %v1671_v33 }
0x1254   :  { %1675 = vadd.xlane.f32.xlu0 %v1674_v16 }
0x12dd   :  { %v1673_v32 = vpop.xlane.xlu0 %1672 }
0x12de   :  { %v1677_v7 = vmul.f32 0.03125, %v1673_v32 }
0x12e0   :  { %v1679_v3 = vadd.f32 1e-05, %v1677_v7 }
0x12e1   :  { %v1676_v6 = vpop.xlane.xlu0 %1675 }
0x12e2   :  { %2790 = vrsqrt.f32 %v1679_v3  ;;  %v1678_v37 = vmul.f32 0.03125, %v1676_v6 }
0x12e4   :  { %v1680_v21 = vadd.f32 1e-05, %v1678_v37 }
0x12e6   :  { %2792 = vrsqrt.f32 %v1680_v21 }
0x12ec   :  { %v2791_v39 = vpop.eup %2790 }
0x12ed   :  { %v1683_v31 = vmul.f32 %v2791_v39, %v1667_v8 }
0x12ef   :  { %v1689_v40 = vmul.f32 %v2067_v41, %v1683_v31 }
0x12f0   :  { %v2793_v63 = vpop.eup %2792 }
0x12f1   :  { %v1684_v12 = vmul.f32 %v2793_v63, %v1668_v38  ;;  %v1695_v17 = vadd.f32 %v2068_v52, %v1689_v40 }
0x12f3   :  { %v1690_v19 = vmul.f32 %v2067_v41, %v1684_v12  ;;  %2408 = vmatprep.mubr.msk.f32.mxu0 %vm37_vm0, %v1695_v17 }
0x12f5   :  { %v1696_v28 = vadd.f32 %v2068_v52, %v1690_v19 }
0x12f7   :  { %2409 = vmatmul.mubr.msk.f32.vlgmr.msra.gmra.mrb[12].mxu0 %vm37_vm0, %v1696_v28 }
0x13ca   :  { %v2410_v30 = vpop.f32.mrb[12].mxu0 }
0x13cb   :  { %v1783_v25 = vadd.f32 %v2410_v30, %v2069_v29  ;;  %v1777_v34 = vpop.f32.mrb[13].mxu0  ;;  %v2078_v30 = vld [vmem:[%s3541_s1 + $0x2b] ss:$0 sm:$0xff] }
0x13cc   :  { %v1778_v35 = vadd.f32 %v2069_v29, %v1777_v34 }
0x13cd   :  { %v1787_v1 = vmax.f32 %v1783_v25, 0.0 }
0x13ce   :  { %v1786_v18 = vmax.f32 %v1778_v35, 0.0 }
0x13d0   :  { %2427 = vmatprep.mubr.msk.f32.mxu1 %vm528_vm5, %v1786_v18 }
0x13d1   :  { %2428 = vmatmul.mubr.msk.f32.vlgmr.msra.gmra.mrb[14].mxu1 %vm528_vm5, %v1787_v1 }
0x14a4   :  { %v2429_v42 = vpop.f32.mrb[14].mxu1 }
0x14a5   :  { %v1878_v62 = vadd.f32 %v2429_v42, %v2072_v53  ;;  %v1872_v36 = vpop.f32.mrb[15].mxu1 }
0x14a6   :  { %v1873_v59 = vadd.f32 %v2072_v53, %v1872_v36 }
0x14a7   :  { %v1882_v43 = vadd.f32 %v1878_v62, %v1696_v28 }
0x14a8   :  { %v1881_v44 = vadd.f32 %v1873_v59, %v1695_v17 }
0x14a9   :  { %v1886_v47 = vsel %vm37_vm0, %v1882_v43, 0.0 }
0x14aa   :  { %1887 = vadd.xlane.f32.xlu0 %v1886_v47  ;;  %v1883_v56 = vsel %vm37_vm0, %v1881_v44, 0.0 }
0x14ab   :  { %1884 = vadd.xlane.f32.xlu1 %v1883_v56 }
0x1537   :  { %v1888_v57 = vpop.xlane.xlu0 %1887 }
0x1538   :  { %v1890_v22 = vmul.f32 0.03125, %v1888_v57  ;;  %v1885_v20 = vpop.xlane.xlu1 %1884 }
0x1539   :  { %v1889_v60 = vmul.f32 0.03125, %v1885_v20 }
0x153a   :  { %v1892_v46 = vsub.f32 %v1882_v43, %v1890_v22 }
0x153b   :  { %v1891_v61 = vsub.f32 %v1881_v44, %v1889_v60 }
0x153c   :  { %v1894_v45 = vmul.f32 %v1892_v46, %v1892_v46 }
0x153d   :  { %v1893_v5 = vmul.f32 %v1891_v61, %v1891_v61 }
0x153e   :  { %v1898_v38 = vsel %vm37_vm0, %v1894_v45, 0.0 }
0x153f   :  { %1899 = vadd.xlane.f32.xlu0 %v1898_v38  ;;  %v1895_v8 = vsel %vm37_vm0, %v1893_v5, 0.0 }
0x1540   :  { %1896 = vadd.xlane.f32.xlu1 %v1895_v8 }
0x15cc   :  { %v1900_v26 = vpop.xlane.xlu0 %1899 }
0x15cd   :  { %v1902_v33 = vmul.f32 0.03125, %v1900_v26  ;;  %v1897_v9 = vpop.xlane.xlu1 %1896 }
0x15ce   :  { %v1901_v16 = vmul.f32 0.03125, %v1897_v9 }
0x15cf   :  { %v1904_v15 = vadd.f32 1e-05, %v1902_v33 }
0x15d0   :  { %v1903_v50 = vadd.f32 1e-05, %v1901_v16 }
0x15d1   :  { %2794 = vrsqrt.f32 %v1904_v15 }
0x15d2   :  { %2796 = vrsqrt.f32 %v1903_v50 }
0x15db   :  { %v2795_v11 = vpop.eup %2794 }
0x15dc   :  { %v2797_v49 = vpop.eup %2796  ;;  %v1908_v0 = vmul.f32 %v2795_v11, %v1892_v46 }
0x15dd   :  { %v1907_v55 = vmul.f32 %v2797_v49, %v1891_v61 }
0x15de   :  { %v1914_v2 = vmul.f32 %v2075_v48, %v1908_v0 }
0x15df   :  { %v1913_v51 = vmul.f32 %v2075_v48, %v1907_v55 }
0x15e0   :  { %v1920_v54 = vadd.f32 %v2076_v4, %v1914_v2 }
0x15e1   :  { %v1919_v13 = vadd.f32 %v2076_v4, %v1913_v51 }
0x15e2   :  { %v1926_v14 = vsel %vm37_vm0, %v1920_v54, 0.0 }
0x15e3   :  { %1927 = vadd.xlane.f32.xlu0 %v1926_v14  ;;  %v1923_v58 = vsel %vm37_vm0, %v1919_v13, 0.0 }
0x15e4   :  { %1924 = vadd.xlane.f32.xlu1 %v1923_v58 }
0x1670   :  { %v1928_v10 = vpop.xlane.xlu0 %1927 }
0x1671   :  { %v1930_v32 = vmul.f32 0.03125, %v1928_v10  ;;  %v1925_v7 = vpop.xlane.xlu1 %1924 }
0x1672   :  { %v1929_v3 = vmul.f32 0.03125, %v1925_v7 }
0x1673   :  { %v1932_v6 = vsub.f32 %v1920_v54, %v1930_v32 }
0x1674   :  { %v1931_v37 = vsub.f32 %v1919_v13, %v1929_v3 }
0x1675   :  { %v1934_v21 = vmul.f32 %v1932_v6, %v1932_v6 }
0x1676   :  { %v1933_v39 = vmul.f32 %v1931_v37, %v1931_v37 }
0x1677   :  { %v1938_v41 = vsel %vm37_vm0, %v1934_v21, 0.0 }
0x1678   :  { %1939 = vadd.xlane.f32.xlu0 %v1938_v41  ;;  %v1935_v31 = vsel %vm37_vm0, %v1933_v39, 0.0 }
0x1679   :  { %1936 = vadd.xlane.f32.xlu1 %v1935_v31 }
0x1705   :  { %v1940_v52 = vpop.xlane.xlu0 %1939 }
0x1706   :  { %v1942_v40 = vmul.f32 0.03125, %v1940_v52  ;;  %v1937_v63 = vpop.xlane.xlu1 %1936 }
0x1707   :  { %v1941_v12 = vmul.f32 0.03125, %v1937_v63 }
0x1708   :  { %v1944_v17 = vadd.f32 1e-05, %v1942_v40 }
0x1709   :  { %v1943_v19 = vadd.f32 1e-05, %v1941_v12 }
0x170a   :  { %2798 = vrsqrt.f32 %v1944_v17 }
0x170b   :  { %2800 = vrsqrt.f32 %v1943_v19 }
0x1714   :  { %v2799_v28 = vpop.eup %2798 }
0x1715   :  { %v2801_v24 = vpop.eup %2800  ;;  %v1948_v23 = vmul.f32 %v2799_v28, %v1932_v6 }
0x1716   :  { %v1947_v29 = vmul.f32 %v2801_v24, %v1931_v37 }
0x1717   :  { %v1954_v25 = vmul.f32 %v2077_v27, %v1948_v23 }
0x1718   :  { %v1953_v34 = vmul.f32 %v2077_v27, %v1947_v29 }
0x1719   :  { %v1960_v35 = vadd.f32 %v2078_v30, %v1954_v25 }
0x171a   :  { %v1959_v18 = vadd.f32 %v2078_v30, %v1953_v34 }
0x171b   :  { %1962 = vst.msk [vmem:[#allocation2 + $0x8] sm:$0xff] %vm37_vm0, %v1960_v35 }
0x171c   :  { %1961 = vst.msk [vmem:[#allocation2] sm:$0xff] %vm37_vm0, %v1959_v18 }
0x171d   :  { %2813 = shalt.err (!%p2810_p4)
}
0x171e   :  { %s2814_s20 = scalar_lea.hbm %s3543_s3, 256 }
0x171f   :  { %p2815_p5 = scmp.ne.s32.totalorder %s3543_s3, %s2814_s20  ;;  %p2818_p6 = scmp.lt.u32.totalorder %s2814_s20, %s3543_s3 }
0x1721   :  { %p2820_p7 = pnand %p2818_p6, %p2815_p5 }
0x1723   :  { %2823 = shalt.err (!%p2820_p7)
}
0x1724   :  { %s2835_s23 = smov 128   ;;  %s2836_s24 = smov 8  }
0x1725   :  { %1974 = dma.vmem_to_hbm [thread:$0]  %s1969_s0, 256, %s3543_s3, [#allocation3], %s2835_s23, %s2835_s23, %s2836_s24  }
0x1726   :  { %2824 = dma.done.wait [#allocation3], 256  }
0x1727   :  { %2825 = vsyncadd [#allocation3], 4294967040 }
0x1728   :  { %1978 = vsyncpa [#allocation3], 1 }

</bundles_post_ra>
